<compile_context>
chip_gen: v6e
topology: v6e:2x2x1
jax: 0.10.0
libtpu: 0.0.40
codegen_flags: <defaults>
</compile_context>

<pallas_src>
import functools

import jax
import jax.numpy as jnp
from jax import lax
from jax.experimental import pallas as pl
from jax.experimental.pallas import tpu as pltpu


# ----------------------------------------------------------------------------
# helpers
# ----------------------------------------------------------------------------
def _round_up(x, m):
    return (x + m - 1) // m * m


def _extract_patches(x, k, stride, pad):
    # x: [N, H, W, C]  ->  [N, OH, OW, k*k*C], last-axis ordering (kh, kw, cin)
    n, h, w, c = x.shape
    xp = jnp.pad(x, ((0, 0), (pad, pad), (pad, pad), (0, 0)))
    oh = (h + 2 * pad - k) // stride + 1
    ow = (w + 2 * pad - k) // stride + 1
    cols = []
    for kh in range(k):
        for kw in range(k):
            cols.append(xp[:, kh:kh + stride * oh:stride, kw:kw + stride * ow:stride, :])
    return jnp.concatenate(cols, axis=-1), oh, ow


# ----------------------------------------------------------------------------
# Pallas kernels
# ----------------------------------------------------------------------------
def _conv_matmul_kernel(p_ref, w_ref, b_ref, o_ref, acc_ref, *, apply_lrelu):
    # p_ref: [tm, tk] bf16 ; w_ref: [tk, Cp] bf16 ; b_ref: [1, Cp] f32
    # o_ref: [tm, Cp]      ; acc_ref: [tm, Cp] f32 scratch
    k = pl.program_id(1)

    @pl.when(k == 0)
    def _():
        acc_ref[...] = jnp.zeros_like(acc_ref)

    acc_ref[...] += jnp.dot(p_ref[...], w_ref[...],
                            preferred_element_type=jnp.float32)

    @pl.when(k == pl.num_programs(1) - 1)
    def _():
        acc = acc_ref[...] + b_ref[...]
        if apply_lrelu:
            acc = jnp.where(acc >= 0, acc, 0.2 * acc)
        o_ref[...] = acc.astype(o_ref.dtype)


def _conv_in_lrelu_kernel(p_ref, w_ref, b_ref, o_ref, acc_ref, *, p_valid):
    # Fused Conv2d + InstanceNorm2d(affine=False, eps=1e-5) + LeakyReLU(0.2).
    # p_ref: [1, Pp, tk] bf16 (one sample) ; w_ref: [tk, Cp] ; b_ref: [1, Cp]
    # o_ref: [1, Pp, Cp] ; acc_ref: [Pp, Cp] f32 scratch
    k = pl.program_id(1)

    @pl.when(k == 0)
    def _():
        acc_ref[...] = jnp.zeros_like(acc_ref)

    acc_ref[...] += jnp.dot(p_ref[0], w_ref[...],
                            preferred_element_type=jnp.float32)

    @pl.when(k == pl.num_programs(1) - 1)
    def _():
        z = acc_ref[...] + b_ref[...]                         # [Pp, Cp] f32
        rows = lax.broadcasted_iota(jnp.int32, z.shape, 0)
        valid = rows < p_valid                                # mask spatial padding
        inv_p = 1.0 / float(p_valid)
        zm = jnp.where(valid, z, 0.0)
        mean = jnp.sum(zm, axis=0, keepdims=True) * inv_p
        d = jnp.where(valid, z - mean, 0.0)
        var = jnp.sum(d * d, axis=0, keepdims=True) * inv_p   # biased var (PyTorch)
        y = (z - mean) * lax.rsqrt(var + 1e-5)
        y = jnp.where(y >= 0, y, 0.2 * y)
        o_ref[0] = y.astype(o_ref.dtype)


# ----------------------------------------------------------------------------
# pallas_call wrappers
# ----------------------------------------------------------------------------
_KW = 4
_VMEM_LIMIT = 64 * 1024 * 1024  # fits v7x's 64 MiB VMEM, fine on v5e/v6e


def conv2d_pallas(x, w, b, *, stride, pad, fuse_lrelu, out_dtype=jnp.bfloat16):
    # Conv2d (+ optional LeakyReLU).  x: [N,H,W,Cin] bf16; w: [kh*kw*Cin, Cout] bf16
    patches, oh, ow = _extract_patches(x, _KW, stride, pad)
    n = x.shape[0]
    K = patches.shape[-1]
    cout = w.shape[-1]
    M = n * oh * ow

    tk = min(512, _round_up(K, 128))
    k_pad = _round_up(K, tk)
    tm = min(256, _round_up(M, 8))
    m_pad = _round_up(M, tm)
    c_pad = _round_up(cout, 128)           # lane-dense output stores

    pm = jnp.pad(patches.reshape(M, K), ((0, m_pad - M), (0, k_pad - K)))
    wp = jnp.pad(w, ((0, k_pad - K), (0, c_pad - cout))).astype(jnp.bfloat16)
    bp = jnp.pad(b, ((0, c_pad - cout),)).reshape(1, c_pad).astype(jnp.float32)

    out = pl.pallas_call(
        functools.partial(_conv_matmul_kernel, apply_lrelu=fuse_lrelu),
        out_shape=jax.ShapeDtypeStruct((m_pad, c_pad), out_dtype),
        grid_spec=pltpu.PrefetchScalarGridSpec(
            num_scalar_prefetch=0,
            grid=(m_pad // tm, k_pad // tk),
            in_specs=[
                pl.BlockSpec((tm, tk), lambda m, k: (m, k)),
                pl.BlockSpec((tk, c_pad), lambda m, k: (k, 0)),   # resident over M
                pl.BlockSpec((1, c_pad), lambda m, k: (0, 0)),
            ],
            out_specs=pl.BlockSpec((tm, c_pad), lambda m, k: (m, 0)),
            scratch_shapes=[pltpu.VMEM((tm, c_pad), jnp.float32)],
        ),
        compiler_params=pltpu.CompilerParams(
            dimension_semantics=("parallel", "arbitrary"),
            vmem_limit_bytes=_VMEM_LIMIT,
        ),
    )(pm, wp, bp)
    return out[:M, :cout].reshape(n, oh, ow, cout)


def conv2d_in_lrelu_pallas(x, w, b, *, stride, pad, out_dtype=jnp.bfloat16):
    # Conv2d + InstanceNorm2d(affine=False) + LeakyReLU(0.2), fully fused.
    patches, oh, ow = _extract_patches(x, _KW, stride, pad)
    n = x.shape[0]
    K = patches.shape[-1]
    cout = w.shape[-1]
    P = oh * ow

    tk = min(512, _round_up(K, 128))
    k_pad = _round_up(K, tk)
    p_pad = _round_up(P, 8)
    c_pad = _round_up(cout, 128)

    pm = jnp.pad(patches.reshape(n, P, K),
                 ((0, 0), (0, p_pad - P), (0, k_pad - K)))
    wp = jnp.pad(w, ((0, k_pad - K), (0, c_pad - cout))).astype(jnp.bfloat16)
    bp = jnp.pad(b, ((0, c_pad - cout),)).reshape(1, c_pad).astype(jnp.float32)

    out = pl.pallas_call(
        functools.partial(_conv_in_lrelu_kernel, p_valid=P),
        out_shape=jax.ShapeDtypeStruct((n, p_pad, c_pad), out_dtype),
        grid_spec=pltpu.PrefetchScalarGridSpec(
            num_scalar_prefetch=0,
            grid=(n, k_pad // tk),
            in_specs=[
                pl.BlockSpec((1, p_pad, tk), lambda i, k: (i, 0, k)),
                pl.BlockSpec((tk, c_pad), lambda i, k: (k, 0)),   # resident over N
                pl.BlockSpec((1, c_pad), lambda i, k: (0, 0)),
            ],
            out_specs=pl.BlockSpec((1, p_pad, c_pad), lambda i, k: (i, 0, 0)),
            scratch_shapes=[pltpu.VMEM((p_pad, c_pad), jnp.float32)],
        ),
        compiler_params=pltpu.CompilerParams(
            dimension_semantics=("parallel", "arbitrary"),
            vmem_limit_bytes=_VMEM_LIMIT,
        ),
    )(pm, wp, bp)
    return out[:, :P, :cout].reshape(n, oh, ow, cout)


# ----------------------------------------------------------------------------
# Discriminator_PatchGAN (cfg: input_nc=4, ndf=32, n_layers=3, norm_type='instance'
# -> no spectral norm, InstanceNorm2d(affine=False) between convs, LeakyReLU 0.2)
# ----------------------------------------------------------------------------
def init_params(key, input_nc, ndf, n_layers):
    cfg = [dict(cin=input_nc, cout=ndf, stride=2, norm=False, lrelu=True)]
    nf = ndf
    for _ in range(1, n_layers):
        nf_prev, nf = nf, min(nf * 2, 512)
        cfg.append(dict(cin=nf_prev, cout=nf, stride=2, norm=True, lrelu=True))
    nf_prev, nf = nf, min(nf * 2, 512)
    cfg.append(dict(cin=nf_prev, cout=nf, stride=1, norm=True, lrelu=True))
    cfg.append(dict(cin=nf, cout=1, stride=1, norm=False, lrelu=False))

    weights = []
    for lyr in cfg:
        key, wk, bk = jax.random.split(key, 3)
        # weights_init: Conv weight ~ N(0, 0.02); bias keeps PyTorch default uniform
        w = 0.02 * jax.random.normal(wk, (_KW, _KW, lyr["cin"], lyr["cout"]), jnp.float32)
        w = w.reshape(_KW * _KW * lyr["cin"], lyr["cout"]).astype(jnp.bfloat16)
        bound = 1.0 / float((_KW * _KW * lyr["cin"]) ** 0.5)
        b = jax.random.uniform(bk, (lyr["cout"],), jnp.float32, -bound, bound)
        weights.append((w, b))
    return tuple(cfg), weights


def make_forward(layer_cfg):
    pad = 2  # int(ceil((4 - 1) / 2))

    def fwd(x_nchw, weights):
        x = jnp.transpose(x_nchw, (0, 2, 3, 1)).astype(jnp.bfloat16)  # NCHW -> NHWC
        n_layers = len(layer_cfg)
        for i, (lyr, (w, b)) in enumerate(zip(layer_cfg, weights)):
            last = i == n_layers - 1
            if lyr["norm"]:
                x = conv2d_in_lrelu_pallas(x, w, b, stride=lyr["stride"], pad=pad)
            else:
                x = conv2d_pallas(
                    x, w, b, stride=lyr["stride"], pad=pad,
                    fuse_lrelu=lyr["lrelu"],
                    out_dtype=jnp.float32 if last else jnp.bfloat16)
        return jnp.transpose(x, (0, 3, 1, 2))  # NHWC -> NCHW

    return jax.jit(fwd)


if __name__ == "__main__":
    key = jax.random.PRNGKey(0)
    key, xkey = jax.random.split(key)

    # cfg: input_nc=4, ndf=32, n_layers=3, norm_type='instance'
    input_nc, ndf, n_layers = 4, 32, 3
    x = jax.random.normal(xkey, (2, input_nc, 16, 16), jnp.float32)  # NCHW like PyTorch

    layer_cfg, weights = init_params(key, input_nc, ndf, n_layers)
    forward = make_forward(layer_cfg)
    out = forward(x, weights)
    out = jax.block_until_ready(out)

    assert out.shape == (2, 1, 5, 5), out.shape  # PatchGAN logit map
    print("KERNEL_OK")
</pallas_src>

<mosaic_0001>
module attributes {stable_mosaic.version = 11 : i64} {
  func.func @_conv_matmul_kernel(%arg0: i32, %arg1: i32, %arg2: memref<168x128xbf16, #tpu.memory_space<vmem>>, %arg3: memref<128x128xbf16, #tpu.memory_space<vmem>>, %arg4: memref<1x128xf32, #tpu.memory_space<vmem>>, %arg5: memref<168x128xbf16, #tpu.memory_space<vmem>>, %arg6: memref<168x128xf32, #tpu.memory_space<vmem>>) attributes {dimension_semantics = [#tpu.dimension_semantics<parallel>, #tpu.dimension_semantics<arbitrary>], iteration_bounds = array<i64: 1, 1>, scalar_prefetch = 0 : i64, scratch_operands = 1 : i64, tpu.core_type = #tpu.core_type<tc>, window_params = [{transform_indices = @transform_0, window_bounds = array<i64: 168, 128>}, {transform_indices = @transform_1, window_bounds = array<i64: 128, 128>}, {pipeline_mode = #tpu.pipeline_mode<synchronous>, transform_indices = @transform_2, window_bounds = array<i64: 1, 128>}, {transform_indices = @transform_3, window_bounds = array<i64: 168, 128>}]} {
    %c0_i32 = arith.constant 0 : i32
    %0 = arith.cmpi eq, %arg1, %c0_i32 : i32
    %1 = arith.extui %0 : i1 to i32
    %c0_i32_0 = arith.constant 0 : i32
    %2 = arith.cmpi ne, %1, %c0_i32_0 : i32
    scf.if %2 {
      %cst_10 = arith.constant 0.000000e+00 : f32
      %12 = vector.broadcast %cst_10 : f32 to vector<168x128xf32>
      %c0_11 = arith.constant 0 : index
      %c0_12 = arith.constant 0 : index
      %13 = vector.load %arg6[%c0_11, %c0_12] : memref<168x128xf32, #tpu.memory_space<vmem>>, vector<168x128xf32>
      tpu.vector_store %arg6[%c0_11, %c0_12], %12 {strides = array<i32>} : memref<168x128xf32, #tpu.memory_space<vmem>>, vector<168x128xf32>,
    } else {
    }
    %c0 = arith.constant 0 : index
    %c0_1 = arith.constant 0 : index
    %3 = vector.load %arg6[%c0, %c0_1] : memref<168x128xf32, #tpu.memory_space<vmem>>, vector<168x128xf32>
    %c0_2 = arith.constant 0 : index
    %c0_3 = arith.constant 0 : index
    %4 = vector.load %arg2[%c0_2, %c0_3] : memref<168x128xbf16, #tpu.memory_space<vmem>>, vector<168x128xbf16>
    %c0_4 = arith.constant 0 : index
    %c0_5 = arith.constant 0 : index
    %5 = vector.load %arg3[%c0_4, %c0_5] : memref<128x128xbf16, #tpu.memory_space<vmem>>, vector<128x128xbf16>
    %cst = arith.constant dense<0.000000e+00> : vector<168x128xf32>
    %6 = tpu.matmul %4, %5, %cst {dimension_numbers = #tpu.dot_dimension_numbers<[1], [0], [0], [1], [0, 0, 1, 1], [], []>} : vector<168x128xbf16>, vector<128x128xbf16>, vector<168x128xf32> -> vector<168x128xf32>
    %7 = arith.addf %3, %6 : vector<168x128xf32>
    %c0_6 = arith.constant 0 : index
    %c0_7 = arith.constant 0 : index
    %8 = vector.load %arg6[%c0_6, %c0_7] : memref<168x128xf32, #tpu.memory_space<vmem>>, vector<168x128xf32>
    tpu.vector_store %arg6[%c0_6, %c0_7], %7 {strides = array<i32>} : memref<168x128xf32, #tpu.memory_space<vmem>>, vector<168x128xf32>,
    %c0_i32_8 = arith.constant 0 : i32
    %9 = arith.cmpi eq, %arg1, %c0_i32_8 : i32
    %10 = arith.extui %9 : i1 to i32
    %c0_i32_9 = arith.constant 0 : i32
    %11 = arith.cmpi ne, %10, %c0_i32_9 : i32
    scf.if %11 {
      %c0_10 = arith.constant 0 : index
      %c0_11 = arith.constant 0 : index
      %12 = vector.load %arg6[%c0_10, %c0_11] : memref<168x128xf32, #tpu.memory_space<vmem>>, vector<168x128xf32>
      %c0_12 = arith.constant 0 : index
      %c0_13 = arith.constant 0 : index
      %13 = vector.load %arg4[%c0_12, %c0_13] : memref<1x128xf32, #tpu.memory_space<vmem>>, vector<1x128xf32>
      %14 = vector.broadcast %13 : vector<1x128xf32> to vector<168x128xf32>
      %15 = arith.addf %12, %14 : vector<168x128xf32>
      %cst_14 = arith.constant 0.000000e+00 : f32
      %16 = vector.broadcast %cst_14 : f32 to vector<168x128xf32>
      %17 = arith.cmpf oge, %15, %16 : vector<168x128xf32>
      %cst_15 = arith.constant 2.000000e-01 : f32
      %18 = vector.broadcast %cst_15 : f32 to vector<168x128xf32>
      %19 = arith.mulf %18, %15 : vector<168x128xf32>
      %20 = arith.select %17, %15, %19 : vector<168x128xi1>, vector<168x128xf32>
      %21 = arith.truncf %20 : vector<168x128xf32> to vector<168x128xbf16>
      %c0_16 = arith.constant 0 : index
      %c0_17 = arith.constant 0 : index
      %22 = vector.load %arg5[%c0_16, %c0_17] : memref<168x128xbf16, #tpu.memory_space<vmem>>, vector<168x128xbf16>
      tpu.vector_store %arg5[%c0_16, %c0_17], %21 {strides = array<i32>} : memref<168x128xbf16, #tpu.memory_space<vmem>>, vector<168x128xbf16>,
    } else {
    }
    return
  }
  func.func @transform_0(%arg0: i32, %arg1: i32) -> (i32, i32) {
    %c0_i32 = arith.constant 0 : i32
    return %arg0, %arg1 : i32, i32
  }
  func.func @transform_1(%arg0: i32, %arg1: i32) -> (i32, i32) {
    %c0_i32 = arith.constant 0 : i32
    %c0_i32_0 = arith.constant 0 : i32
    return %arg1, %c0_i32 : i32, i32
  }
  func.func @transform_2(%arg0: i32, %arg1: i32) -> (i32, i32) {
    %c0_i32 = arith.constant 0 : i32
    %c0_i32_0 = arith.constant 0 : i32
    %c0_i32_1 = arith.constant 0 : i32
    return %c0_i32, %c0_i32_0 : i32, i32
  }
  func.func @transform_3(%arg0: i32, %arg1: i32) -> (i32, i32) {
    %c0_i32 = arith.constant 0 : i32
    %c0_i32_0 = arith.constant 0 : i32
    return %arg0, %c0_i32 : i32, i32
  }
}

module attributes {stable_mosaic.version = 11 : i64} {
  func.func @_conv_in_lrelu_kernel(%arg0: i32, %arg1: i32, %arg2: memref<1x32x512xbf16, #tpu.memory_space<vmem>>, %arg3: memref<512x128xbf16, #tpu.memory_space<vmem>>, %arg4: memref<1x128xf32, #tpu.memory_space<vmem>>, %arg5: memref<1x32x128xbf16, #tpu.memory_space<vmem>>, %arg6: memref<32x128xf32, #tpu.memory_space<vmem>>) attributes {dimension_semantics = [#tpu.dimension_semantics<parallel>, #tpu.dimension_semantics<arbitrary>], iteration_bounds = array<i64: 2, 1>, scalar_prefetch = 0 : i64, scratch_operands = 1 : i64, tpu.core_type = #tpu.core_type<tc>, window_params = [{transform_indices = @transform_0, window_bounds = array<i64: 1, 32, 512>}, {transform_indices = @transform_1, window_bounds = array<i64: 512, 128>}, {pipeline_mode = #tpu.pipeline_mode<synchronous>, transform_indices = @transform_2, window_bounds = array<i64: 1, 128>}, {transform_indices = @transform_3, window_bounds = array<i64: 1, 32, 128>}]} {
    %c0_i32 = arith.constant 0 : i32
    %0 = arith.cmpi eq, %arg1, %c0_i32 : i32
    %1 = arith.extui %0 : i1 to i32
    %c0_i32_0 = arith.constant 0 : i32
    %2 = arith.cmpi ne, %1, %c0_i32_0 : i32
    scf.if %2 {
      %cst_11 = arith.constant 0.000000e+00 : f32
      %13 = vector.broadcast %cst_11 : f32 to vector<32x128xf32>
      %c0_12 = arith.constant 0 : index
      %c0_13 = arith.constant 0 : index
      %14 = vector.load %arg6[%c0_12, %c0_13] : memref<32x128xf32, #tpu.memory_space<vmem>>, vector<32x128xf32>
      tpu.vector_store %arg6[%c0_12, %c0_13], %13 {strides = array<i32>} : memref<32x128xf32, #tpu.memory_space<vmem>>, vector<32x128xf32>,
    } else {
    }
    %c0 = arith.constant 0 : index
    %c0_1 = arith.constant 0 : index
    %3 = vector.load %arg6[%c0, %c0_1] : memref<32x128xf32, #tpu.memory_space<vmem>>, vector<32x128xf32>
    %c0_2 = arith.constant 0 : index
    %c0_3 = arith.constant 0 : index
    %c0_4 = arith.constant 0 : index
    %4 = vector.load %arg2[%c0_2, %c0_3, %c0_4] : memref<1x32x512xbf16, #tpu.memory_space<vmem>>, vector<1x32x512xbf16>
    %5 = vector.shape_cast %4 : vector<1x32x512xbf16> to vector<32x512xbf16>
    %c0_5 = arith.constant 0 : index
    %c0_6 = arith.constant 0 : index
    %6 = vector.load %arg3[%c0_5, %c0_6] : memref<512x128xbf16, #tpu.memory_space<vmem>>, vector<512x128xbf16>
    %cst = arith.constant dense<0.000000e+00> : vector<32x128xf32>
    %7 = tpu.matmul %5, %6, %cst {dimension_numbers = #tpu.dot_dimension_numbers<[1], [0], [0], [1], [0, 0, 1, 1], [], []>} : vector<32x512xbf16>, vector<512x128xbf16>, vector<32x128xf32> -> vector<32x128xf32>
    %8 = arith.addf %3, %7 : vector<32x128xf32>
    %c0_7 = arith.constant 0 : index
    %c0_8 = arith.constant 0 : index
    %9 = vector.load %arg6[%c0_7, %c0_8] : memref<32x128xf32, #tpu.memory_space<vmem>>, vector<32x128xf32>
    tpu.vector_store %arg6[%c0_7, %c0_8], %8 {strides = array<i32>} : memref<32x128xf32, #tpu.memory_space<vmem>>, vector<32x128xf32>,
    %c0_i32_9 = arith.constant 0 : i32
    %10 = arith.cmpi eq, %arg1, %c0_i32_9 : i32
    %11 = arith.extui %10 : i1 to i32
    %c0_i32_10 = arith.constant 0 : i32
    %12 = arith.cmpi ne, %11, %c0_i32_10 : i32
    scf.if %12 {
      %c0_11 = arith.constant 0 : index
      %c0_12 = arith.constant 0 : index
      %13 = vector.load %arg6[%c0_11, %c0_12] : memref<32x128xf32, #tpu.memory_space<vmem>>, vector<32x128xf32>
      %c0_13 = arith.constant 0 : index
      %c0_14 = arith.constant 0 : index
      %14 = vector.load %arg4[%c0_13, %c0_14] : memref<1x128xf32, #tpu.memory_space<vmem>>, vector<1x128xf32>
      %15 = vector.broadcast %14 : vector<1x128xf32> to vector<32x128xf32>
      %16 = arith.addf %13, %15 : vector<32x128xf32>
      %17 = tpu.iota {dimensions = array<i32: 0>} : vector<32x128xi32>
      %c25_i32 = arith.constant 25 : i32
      %18 = vector.broadcast %c25_i32 : i32 to vector<32x128xi32>
      %19 = arith.cmpi slt, %17, %18 : vector<32x128xi32>
      %cst_15 = arith.constant 0.000000e+00 : f32
      %20 = vector.broadcast %cst_15 : f32 to vector<32x128xf32>
      %21 = arith.select %19, %16, %20 : vector<32x128xi1>, vector<32x128xf32>
      %cst_16 = arith.constant dense<0.000000e+00> : vector<128xf32>
      %22 = vector.multi_reduction <add>, %21, %cst_16 [0] : vector<32x128xf32> to vector<128xf32>
      %23 = vector.shape_cast %22 : vector<128xf32> to vector<1x128xf32>
      %cst_17 = arith.constant 4.000000e-02 : f32
      %24 = vector.broadcast %cst_17 : f32 to vector<1x128xf32>
      %25 = arith.mulf %23, %24 : vector<1x128xf32>
      %26 = vector.broadcast %25 : vector<1x128xf32> to vector<32x128xf32>
      %27 = arith.subf %16, %26 : vector<32x128xf32>
      %cst_18 = arith.constant 0.000000e+00 : f32
      %28 = vector.broadcast %cst_18 : f32 to vector<32x128xf32>
      %29 = arith.select %19, %27, %28 : vector<32x128xi1>, vector<32x128xf32>
      %30 = arith.mulf %29, %29 : vector<32x128xf32>
      %cst_19 = arith.constant dense<0.000000e+00> : vector<128xf32>
      %31 = vector.multi_reduction <add>, %30, %cst_19 [0] : vector<32x128xf32> to vector<128xf32>
      %32 = vector.shape_cast %31 : vector<128xf32> to vector<1x128xf32>
      %cst_20 = arith.constant 4.000000e-02 : f32
      %33 = vector.broadcast %cst_20 : f32 to vector<1x128xf32>
      %34 = arith.mulf %32, %33 : vector<1x128xf32>
      %35 = vector.broadcast %25 : vector<1x128xf32> to vector<32x128xf32>
      %36 = arith.subf %16, %35 : vector<32x128xf32>
      %cst_21 = arith.constant 9.99999974E-6 : f32
      %37 = vector.broadcast %cst_21 : f32 to vector<1x128xf32>
      %38 = arith.addf %34, %37 : vector<1x128xf32>
      %39 = math.rsqrt %38 : vector<1x128xf32>
      %40 = vector.broadcast %39 : vector<1x128xf32> to vector<32x128xf32>
      %41 = arith.mulf %36, %40 : vector<32x128xf32>
      %cst_22 = arith.constant 0.000000e+00 : f32
      %42 = vector.broadcast %cst_22 : f32 to vector<32x128xf32>
      %43 = arith.cmpf oge, %41, %42 : vector<32x128xf32>
      %cst_23 = arith.constant 2.000000e-01 : f32
      %44 = vector.broadcast %cst_23 : f32 to vector<32x128xf32>
      %45 = arith.mulf %44, %41 : vector<32x128xf32>
      %46 = arith.select %43, %41, %45 : vector<32x128xi1>, vector<32x128xf32>
      %47 = arith.truncf %46 : vector<32x128xf32> to vector<32x128xbf16>
      %c0_24 = arith.constant 0 : index
      %c0_25 = arith.constant 0 : index
      %c0_26 = arith.constant 0 : index
      %48 = vector.load %arg5[%c0_24, %c0_25, %c0_26] : memref<1x32x128xbf16, #tpu.memory_space<vmem>>, vector<1x32x128xbf16>
      %49 = vector.shape_cast %48 : vector<1x32x128xbf16> to vector<32x128xbf16>
      %50 = vector.shape_cast %47 : vector<32x128xbf16> to vector<1x32x128xbf16>
      tpu.vector_store %arg5[%c0_24, %c0_25, %c0_26], %50 {strides = array<i32>} : memref<1x32x128xbf16, #tpu.memory_space<vmem>>, vector<1x32x128xbf16>,
    } else {
    }
    return
  }
  func.func @transform_0(%arg0: i32, %arg1: i32) -> (i32, i32, i32) {
    %c0_i32 = arith.constant 0 : i32
    %c0_i32_0 = arith.constant 0 : i32
    return %arg0, %c0_i32, %arg1 : i32, i32, i32
  }
  func.func @transform_1(%arg0: i32, %arg1: i32) -> (i32, i32) {
    %c0_i32 = arith.constant 0 : i32
    %c0_i32_0 = arith.constant 0 : i32
    return %arg1, %c0_i32 : i32, i32
  }
  func.func @transform_2(%arg0: i32, %arg1: i32) -> (i32, i32) {
    %c0_i32 = arith.constant 0 : i32
    %c0_i32_0 = arith.constant 0 : i32
    %c0_i32_1 = arith.constant 0 : i32
    return %c0_i32, %c0_i32_0 : i32, i32
  }
  func.func @transform_3(%arg0: i32, %arg1: i32) -> (i32, i32, i32) {
    %c0_i32 = arith.constant 0 : i32
    %c0_i32_0 = arith.constant 0 : i32
    %c0_i32_1 = arith.constant 0 : i32
    return %arg0, %c0_i32, %c0_i32_0 : i32, i32, i32
  }
}

module attributes {stable_mosaic.version = 11 : i64} {
  func.func @_conv_in_lrelu_kernel(%arg0: i32, %arg1: i32, %arg2: memref<1x16x512xbf16, #tpu.memory_space<vmem>>, %arg3: memref<512x128xbf16, #tpu.memory_space<vmem>>, %arg4: memref<1x128xf32, #tpu.memory_space<vmem>>, %arg5: memref<1x16x128xbf16, #tpu.memory_space<vmem>>, %arg6: memref<16x128xf32, #tpu.memory_space<vmem>>) attributes {dimension_semantics = [#tpu.dimension_semantics<parallel>, #tpu.dimension_semantics<arbitrary>], iteration_bounds = array<i64: 2, 2>, scalar_prefetch = 0 : i64, scratch_operands = 1 : i64, tpu.core_type = #tpu.core_type<tc>, window_params = [{transform_indices = @transform_0, window_bounds = array<i64: 1, 16, 512>}, {transform_indices = @transform_1, window_bounds = array<i64: 512, 128>}, {pipeline_mode = #tpu.pipeline_mode<synchronous>, transform_indices = @transform_2, window_bounds = array<i64: 1, 128>}, {transform_indices = @transform_3, window_bounds = array<i64: 1, 16, 128>}]} {
    %c0_i32 = arith.constant 0 : i32
    %0 = arith.cmpi eq, %arg1, %c0_i32 : i32
    %1 = arith.extui %0 : i1 to i32
    %c0_i32_0 = arith.constant 0 : i32
    %2 = arith.cmpi ne, %1, %c0_i32_0 : i32
    scf.if %2 {
      %cst_10 = arith.constant 0.000000e+00 : f32
      %13 = vector.broadcast %cst_10 : f32 to vector<16x128xf32>
      %c0_11 = arith.constant 0 : index
      %c0_12 = arith.constant 0 : index
      %14 = vector.load %arg6[%c0_11, %c0_12] : memref<16x128xf32, #tpu.memory_space<vmem>>, vector<16x128xf32>
      tpu.vector_store %arg6[%c0_11, %c0_12], %13 {strides = array<i32>} : memref<16x128xf32, #tpu.memory_space<vmem>>, vector<16x128xf32>,
    } else {
    }
    %c0 = arith.constant 0 : index
    %c0_1 = arith.constant 0 : index
    %3 = vector.load %arg6[%c0, %c0_1] : memref<16x128xf32, #tpu.memory_space<vmem>>, vector<16x128xf32>
    %c0_2 = arith.constant 0 : index
    %c0_3 = arith.constant 0 : index
    %c0_4 = arith.constant 0 : index
    %4 = vector.load %arg2[%c0_2, %c0_3, %c0_4] : memref<1x16x512xbf16, #tpu.memory_space<vmem>>, vector<1x16x512xbf16>
    %5 = vector.shape_cast %4 : vector<1x16x512xbf16> to vector<16x512xbf16>
    %c0_5 = arith.constant 0 : index
    %c0_6 = arith.constant 0 : index
    %6 = vector.load %arg3[%c0_5, %c0_6] : memref<512x128xbf16, #tpu.memory_space<vmem>>, vector<512x128xbf16>
    %cst = arith.constant dense<0.000000e+00> : vector<16x128xf32>
    %7 = tpu.matmul %5, %6, %cst {dimension_numbers = #tpu.dot_dimension_numbers<[1], [0], [0], [1], [0, 0, 1, 1], [], []>} : vector<16x512xbf16>, vector<512x128xbf16>, vector<16x128xf32> -> vector<16x128xf32>
    %8 = arith.addf %3, %7 : vector<16x128xf32>
    %c0_7 = arith.constant 0 : index
    %c0_8 = arith.constant 0 : index
    %9 = vector.load %arg6[%c0_7, %c0_8] : memref<16x128xf32, #tpu.memory_space<vmem>>, vector<16x128xf32>
    tpu.vector_store %arg6[%c0_7, %c0_8], %8 {strides = array<i32>} : memref<16x128xf32, #tpu.memory_space<vmem>>, vector<16x128xf32>,
    %c1_i32 = arith.constant 1 : i32
    %10 = arith.cmpi eq, %arg1, %c1_i32 : i32
    %11 = arith.extui %10 : i1 to i32
    %c0_i32_9 = arith.constant 0 : i32
    %12 = arith.cmpi ne, %11, %c0_i32_9 : i32
    scf.if %12 {
      %c0_10 = arith.constant 0 : index
      %c0_11 = arith.constant 0 : index
      %13 = vector.load %arg6[%c0_10, %c0_11] : memref<16x128xf32, #tpu.memory_space<vmem>>, vector<16x128xf32>
      %c0_12 = arith.constant 0 : index
      %c0_13 = arith.constant 0 : index
      %14 = vector.load %arg4[%c0_12, %c0_13] : memref<1x128xf32, #tpu.memory_space<vmem>>, vector<1x128xf32>
      %15 = vector.broadcast %14 : vector<1x128xf32> to vector<16x128xf32>
      %16 = arith.addf %13, %15 : vector<16x128xf32>
      %17 = tpu.iota {dimensions = array<i32: 0>} : vector<16x128xi32>
      %c9_i32 = arith.constant 9 : i32
      %18 = vector.broadcast %c9_i32 : i32 to vector<16x128xi32>
      %19 = arith.cmpi slt, %17, %18 : vector<16x128xi32>
      %cst_14 = arith.constant 0.000000e+00 : f32
      %20 = vector.broadcast %cst_14 : f32 to vector<16x128xf32>
      %21 = arith.select %19, %16, %20 : vector<16x128xi1>, vector<16x128xf32>
      %cst_15 = arith.constant dense<0.000000e+00> : vector<128xf32>
      %22 = vector.multi_reduction <add>, %21, %cst_15 [0] : vector<16x128xf32> to vector<128xf32>
      %23 = vector.shape_cast %22 : vector<128xf32> to vector<1x128xf32>
      %cst_16 = arith.constant 0.111111112 : f32
      %24 = vector.broadcast %cst_16 : f32 to vector<1x128xf32>
      %25 = arith.mulf %23, %24 : vector<1x128xf32>
      %26 = vector.broadcast %25 : vector<1x128xf32> to vector<16x128xf32>
      %27 = arith.subf %16, %26 : vector<16x128xf32>
      %cst_17 = arith.constant 0.000000e+00 : f32
      %28 = vector.broadcast %cst_17 : f32 to vector<16x128xf32>
      %29 = arith.select %19, %27, %28 : vector<16x128xi1>, vector<16x128xf32>
      %30 = arith.mulf %29, %29 : vector<16x128xf32>
      %cst_18 = arith.constant dense<0.000000e+00> : vector<128xf32>
      %31 = vector.multi_reduction <add>, %30, %cst_18 [0] : vector<16x128xf32> to vector<128xf32>
      %32 = vector.shape_cast %31 : vector<128xf32> to vector<1x128xf32>
      %cst_19 = arith.constant 0.111111112 : f32
      %33 = vector.broadcast %cst_19 : f32 to vector<1x128xf32>
      %34 = arith.mulf %32, %33 : vector<1x128xf32>
      %35 = vector.broadcast %25 : vector<1x128xf32> to vector<16x128xf32>
      %36 = arith.subf %16, %35 : vector<16x128xf32>
      %cst_20 = arith.constant 9.99999974E-6 : f32
      %37 = vector.broadcast %cst_20 : f32 to vector<1x128xf32>
      %38 = arith.addf %34, %37 : vector<1x128xf32>
      %39 = math.rsqrt %38 : vector<1x128xf32>
      %40 = vector.broadcast %39 : vector<1x128xf32> to vector<16x128xf32>
      %41 = arith.mulf %36, %40 : vector<16x128xf32>
      %cst_21 = arith.constant 0.000000e+00 : f32
      %42 = vector.broadcast %cst_21 : f32 to vector<16x128xf32>
      %43 = arith.cmpf oge, %41, %42 : vector<16x128xf32>
      %cst_22 = arith.constant 2.000000e-01 : f32
      %44 = vector.broadcast %cst_22 : f32 to vector<16x128xf32>
      %45 = arith.mulf %44, %41 : vector<16x128xf32>
      %46 = arith.select %43, %41, %45 : vector<16x128xi1>, vector<16x128xf32>
      %47 = arith.truncf %46 : vector<16x128xf32> to vector<16x128xbf16>
      %c0_23 = arith.constant 0 : index
      %c0_24 = arith.constant 0 : index
      %c0_25 = arith.constant 0 : index
      %48 = vector.load %arg5[%c0_23, %c0_24, %c0_25] : memref<1x16x128xbf16, #tpu.memory_space<vmem>>, vector<1x16x128xbf16>
      %49 = vector.shape_cast %48 : vector<1x16x128xbf16> to vector<16x128xbf16>
      %50 = vector.shape_cast %47 : vector<16x128xbf16> to vector<1x16x128xbf16>
      tpu.vector_store %arg5[%c0_23, %c0_24, %c0_25], %50 {strides = array<i32>} : memref<1x16x128xbf16, #tpu.memory_space<vmem>>, vector<1x16x128xbf16>,
    } else {
    }
    return
  }
  func.func @transform_0(%arg0: i32, %arg1: i32) -> (i32, i32, i32) {
    %c0_i32 = arith.constant 0 : i32
    %c0_i32_0 = arith.constant 0 : i32
    return %arg0, %c0_i32, %arg1 : i32, i32, i32
  }
  func.func @transform_1(%arg0: i32, %arg1: i32) -> (i32, i32) {
    %c0_i32 = arith.constant 0 : i32
    %c0_i32_0 = arith.constant 0 : i32
    return %arg1, %c0_i32 : i32, i32
  }
  func.func @transform_2(%arg0: i32, %arg1: i32) -> (i32, i32) {
    %c0_i32 = arith.constant 0 : i32
    %c0_i32_0 = arith.constant 0 : i32
    %c0_i32_1 = arith.constant 0 : i32
    return %c0_i32, %c0_i32_0 : i32, i32
  }
  func.func @transform_3(%arg0: i32, %arg1: i32) -> (i32, i32, i32) {
    %c0_i32 = arith.constant 0 : i32
    %c0_i32_0 = arith.constant 0 : i32
    %c0_i32_1 = arith.constant 0 : i32
    return %arg0, %c0_i32, %c0_i32_0 : i32, i32, i32
  }
}

module attributes {stable_mosaic.version = 11 : i64} {
  func.func @_conv_in_lrelu_kernel(%arg0: i32, %arg1: i32, %arg2: memref<1x16x512xbf16, #tpu.memory_space<vmem>>, %arg3: memref<512x256xbf16, #tpu.memory_space<vmem>>, %arg4: memref<1x256xf32, #tpu.memory_space<vmem>>, %arg5: memref<1x16x256xbf16, #tpu.memory_space<vmem>>, %arg6: memref<16x256xf32, #tpu.memory_space<vmem>>) attributes {dimension_semantics = [#tpu.dimension_semantics<parallel>, #tpu.dimension_semantics<arbitrary>], iteration_bounds = array<i64: 2, 4>, scalar_prefetch = 0 : i64, scratch_operands = 1 : i64, tpu.core_type = #tpu.core_type<tc>, window_params = [{transform_indices = @transform_0, window_bounds = array<i64: 1, 16, 512>}, {transform_indices = @transform_1, window_bounds = array<i64: 512, 256>}, {pipeline_mode = #tpu.pipeline_mode<synchronous>, transform_indices = @transform_2, window_bounds = array<i64: 1, 256>}, {transform_indices = @transform_3, window_bounds = array<i64: 1, 16, 256>}]} {
    %c0_i32 = arith.constant 0 : i32
    %0 = arith.cmpi eq, %arg1, %c0_i32 : i32
    %1 = arith.extui %0 : i1 to i32
    %c0_i32_0 = arith.constant 0 : i32
    %2 = arith.cmpi ne, %1, %c0_i32_0 : i32
    scf.if %2 {
      %cst_10 = arith.constant 0.000000e+00 : f32
      %13 = vector.broadcast %cst_10 : f32 to vector<16x256xf32>
      %c0_11 = arith.constant 0 : index
      %c0_12 = arith.constant 0 : index
      %14 = vector.load %arg6[%c0_11, %c0_12] : memref<16x256xf32, #tpu.memory_space<vmem>>, vector<16x256xf32>
      tpu.vector_store %arg6[%c0_11, %c0_12], %13 {strides = array<i32>} : memref<16x256xf32, #tpu.memory_space<vmem>>, vector<16x256xf32>,
    } else {
    }
    %c0 = arith.constant 0 : index
    %c0_1 = arith.constant 0 : index
    %3 = vector.load %arg6[%c0, %c0_1] : memref<16x256xf32, #tpu.memory_space<vmem>>, vector<16x256xf32>
    %c0_2 = arith.constant 0 : index
    %c0_3 = arith.constant 0 : index
    %c0_4 = arith.constant 0 : index
    %4 = vector.load %arg2[%c0_2, %c0_3, %c0_4] : memref<1x16x512xbf16, #tpu.memory_space<vmem>>, vector<1x16x512xbf16>
    %5 = vector.shape_cast %4 : vector<1x16x512xbf16> to vector<16x512xbf16>
    %c0_5 = arith.constant 0 : index
    %c0_6 = arith.constant 0 : index
    %6 = vector.load %arg3[%c0_5, %c0_6] : memref<512x256xbf16, #tpu.memory_space<vmem>>, vector<512x256xbf16>
    %cst = arith.constant dense<0.000000e+00> : vector<16x256xf32>
    %7 = tpu.matmul %5, %6, %cst {dimension_numbers = #tpu.dot_dimension_numbers<[1], [0], [0], [1], [0, 0, 1, 1], [], []>} : vector<16x512xbf16>, vector<512x256xbf16>, vector<16x256xf32> -> vector<16x256xf32>
    %8 = arith.addf %3, %7 : vector<16x256xf32>
    %c0_7 = arith.constant 0 : index
    %c0_8 = arith.constant 0 : index
    %9 = vector.load %arg6[%c0_7, %c0_8] : memref<16x256xf32, #tpu.memory_space<vmem>>, vector<16x256xf32>
    tpu.vector_store %arg6[%c0_7, %c0_8], %8 {strides = array<i32>} : memref<16x256xf32, #tpu.memory_space<vmem>>, vector<16x256xf32>,
    %c3_i32 = arith.constant 3 : i32
    %10 = arith.cmpi eq, %arg1, %c3_i32 : i32
    %11 = arith.extui %10 : i1 to i32
    %c0_i32_9 = arith.constant 0 : i32
    %12 = arith.cmpi ne, %11, %c0_i32_9 : i32
    scf.if %12 {
      %c0_10 = arith.constant 0 : index
      %c0_11 = arith.constant 0 : index
      %13 = vector.load %arg6[%c0_10, %c0_11] : memref<16x256xf32, #tpu.memory_space<vmem>>, vector<16x256xf32>
      %c0_12 = arith.constant 0 : index
      %c0_13 = arith.constant 0 : index
      %14 = vector.load %arg4[%c0_12, %c0_13] : memref<1x256xf32, #tpu.memory_space<vmem>>, vector<1x256xf32>
      %15 = vector.broadcast %14 : vector<1x256xf32> to vector<16x256xf32>
      %16 = arith.addf %13, %15 : vector<16x256xf32>
      %17 = tpu.iota {dimensions = array<i32: 0>} : vector<16x256xi32>
      %c16_i32 = arith.constant 16 : i32
      %18 = vector.broadcast %c16_i32 : i32 to vector<16x256xi32>
      %19 = arith.cmpi slt, %17, %18 : vector<16x256xi32>
      %cst_14 = arith.constant 0.000000e+00 : f32
      %20 = vector.broadcast %cst_14 : f32 to vector<16x256xf32>
      %21 = arith.select %19, %16, %20 : vector<16x256xi1>, vector<16x256xf32>
      %cst_15 = arith.constant dense<0.000000e+00> : vector<256xf32>
      %22 = vector.multi_reduction <add>, %21, %cst_15 [0] : vector<16x256xf32> to vector<256xf32>
      %23 = vector.shape_cast %22 : vector<256xf32> to vector<1x256xf32>
      %cst_16 = arith.constant 6.250000e-02 : f32
      %24 = vector.broadcast %cst_16 : f32 to vector<1x256xf32>
      %25 = arith.mulf %23, %24 : vector<1x256xf32>
      %26 = vector.broadcast %25 : vector<1x256xf32> to vector<16x256xf32>
      %27 = arith.subf %16, %26 : vector<16x256xf32>
      %cst_17 = arith.constant 0.000000e+00 : f32
      %28 = vector.broadcast %cst_17 : f32 to vector<16x256xf32>
      %29 = arith.select %19, %27, %28 : vector<16x256xi1>, vector<16x256xf32>
      %30 = arith.mulf %29, %29 : vector<16x256xf32>
      %cst_18 = arith.constant dense<0.000000e+00> : vector<256xf32>
      %31 = vector.multi_reduction <add>, %30, %cst_18 [0] : vector<16x256xf32> to vector<256xf32>
      %32 = vector.shape_cast %31 : vector<256xf32> to vector<1x256xf32>
      %cst_19 = arith.constant 6.250000e-02 : f32
      %33 = vector.broadcast %cst_19 : f32 to vector<1x256xf32>
      %34 = arith.mulf %32, %33 : vector<1x256xf32>
      %35 = vector.broadcast %25 : vector<1x256xf32> to vector<16x256xf32>
      %36 = arith.subf %16, %35 : vector<16x256xf32>
      %cst_20 = arith.constant 9.99999974E-6 : f32
      %37 = vector.broadcast %cst_20 : f32 to vector<1x256xf32>
      %38 = arith.addf %34, %37 : vector<1x256xf32>
      %39 = math.rsqrt %38 : vector<1x256xf32>
      %40 = vector.broadcast %39 : vector<1x256xf32> to vector<16x256xf32>
      %41 = arith.mulf %36, %40 : vector<16x256xf32>
      %cst_21 = arith.constant 0.000000e+00 : f32
      %42 = vector.broadcast %cst_21 : f32 to vector<16x256xf32>
      %43 = arith.cmpf oge, %41, %42 : vector<16x256xf32>
      %cst_22 = arith.constant 2.000000e-01 : f32
      %44 = vector.broadcast %cst_22 : f32 to vector<16x256xf32>
      %45 = arith.mulf %44, %41 : vector<16x256xf32>
      %46 = arith.select %43, %41, %45 : vector<16x256xi1>, vector<16x256xf32>
      %47 = arith.truncf %46 : vector<16x256xf32> to vector<16x256xbf16>
      %c0_23 = arith.constant 0 : index
      %c0_24 = arith.constant 0 : index
      %c0_25 = arith.constant 0 : index
      %48 = vector.load %arg5[%c0_23, %c0_24, %c0_25] : memref<1x16x256xbf16, #tpu.memory_space<vmem>>, vector<1x16x256xbf16>
      %49 = vector.shape_cast %48 : vector<1x16x256xbf16> to vector<16x256xbf16>
      %50 = vector.shape_cast %47 : vector<16x256xbf16> to vector<1x16x256xbf16>
      tpu.vector_store %arg5[%c0_23, %c0_24, %c0_25], %50 {strides = array<i32>} : memref<1x16x256xbf16, #tpu.memory_space<vmem>>, vector<1x16x256xbf16>,
    } else {
    }
    return
  }
  func.func @transform_0(%arg0: i32, %arg1: i32) -> (i32, i32, i32) {
    %c0_i32 = arith.constant 0 : i32
    %c0_i32_0 = arith.constant 0 : i32
    return %arg0, %c0_i32, %arg1 : i32, i32, i32
  }
  func.func @transform_1(%arg0: i32, %arg1: i32) -> (i32, i32) {
    %c0_i32 = arith.constant 0 : i32
    %c0_i32_0 = arith.constant 0 : i32
    return %arg1, %c0_i32 : i32, i32
  }
  func.func @transform_2(%arg0: i32, %arg1: i32) -> (i32, i32) {
    %c0_i32 = arith.constant 0 : i32
    %c0_i32_0 = arith.constant 0 : i32
    %c0_i32_1 = arith.constant 0 : i32
    return %c0_i32, %c0_i32_0 : i32, i32
  }
  func.func @transform_3(%arg0: i32, %arg1: i32) -> (i32, i32, i32) {
    %c0_i32 = arith.constant 0 : i32
    %c0_i32_0 = arith.constant 0 : i32
    %c0_i32_1 = arith.constant 0 : i32
    return %arg0, %c0_i32, %c0_i32_0 : i32, i32, i32
  }
}

module attributes {stable_mosaic.version = 11 : i64} {
  func.func @_conv_matmul_kernel(%arg0: i32, %arg1: i32, %arg2: memref<56x512xbf16, #tpu.memory_space<vmem>>, %arg3: memref<512x128xbf16, #tpu.memory_space<vmem>>, %arg4: memref<1x128xf32, #tpu.memory_space<vmem>>, %arg5: memref<56x128xf32, #tpu.memory_space<vmem>>, %arg6: memref<56x128xf32, #tpu.memory_space<vmem>>) attributes {dimension_semantics = [#tpu.dimension_semantics<parallel>, #tpu.dimension_semantics<arbitrary>], iteration_bounds = array<i64: 1, 8>, scalar_prefetch = 0 : i64, scratch_operands = 1 : i64, tpu.core_type = #tpu.core_type<tc>, window_params = [{transform_indices = @transform_0, window_bounds = array<i64: 56, 512>}, {transform_indices = @transform_1, window_bounds = array<i64: 512, 128>}, {pipeline_mode = #tpu.pipeline_mode<synchronous>, transform_indices = @transform_2, window_bounds = array<i64: 1, 128>}, {transform_indices = @transform_3, window_bounds = array<i64: 56, 128>}]} {
    %c0_i32 = arith.constant 0 : i32
    %0 = arith.cmpi eq, %arg1, %c0_i32 : i32
    %1 = arith.extui %0 : i1 to i32
    %c0_i32_0 = arith.constant 0 : i32
    %2 = arith.cmpi ne, %1, %c0_i32_0 : i32
    scf.if %2 {
      %cst_9 = arith.constant 0.000000e+00 : f32
      %12 = vector.broadcast %cst_9 : f32 to vector<56x128xf32>
      %c0_10 = arith.constant 0 : index
      %c0_11 = arith.constant 0 : index
      %13 = vector.load %arg6[%c0_10, %c0_11] : memref<56x128xf32, #tpu.memory_space<vmem>>, vector<56x128xf32>
      tpu.vector_store %arg6[%c0_10, %c0_11], %12 {strides = array<i32>} : memref<56x128xf32, #tpu.memory_space<vmem>>, vector<56x128xf32>,
    } else {
    }
    %c0 = arith.constant 0 : index
    %c0_1 = arith.constant 0 : index
    %3 = vector.load %arg6[%c0, %c0_1] : memref<56x128xf32, #tpu.memory_space<vmem>>, vector<56x128xf32>
    %c0_2 = arith.constant 0 : index
    %c0_3 = arith.constant 0 : index
    %4 = vector.load %arg2[%c0_2, %c0_3] : memref<56x512xbf16, #tpu.memory_space<vmem>>, vector<56x512xbf16>
    %c0_4 = arith.constant 0 : index
    %c0_5 = arith.constant 0 : index
    %5 = vector.load %arg3[%c0_4, %c0_5] : memref<512x128xbf16, #tpu.memory_space<vmem>>, vector<512x128xbf16>
    %cst = arith.constant dense<0.000000e+00> : vector<56x128xf32>
    %6 = tpu.matmul %4, %5, %cst {dimension_numbers = #tpu.dot_dimension_numbers<[1], [0], [0], [1], [0, 0, 1, 1], [], []>} : vector<56x512xbf16>, vector<512x128xbf16>, vector<56x128xf32> -> vector<56x128xf32>
    %7 = arith.addf %3, %6 : vector<56x128xf32>
    %c0_6 = arith.constant 0 : index
    %c0_7 = arith.constant 0 : index
    %8 = vector.load %arg6[%c0_6, %c0_7] : memref<56x128xf32, #tpu.memory_space<vmem>>, vector<56x128xf32>
    tpu.vector_store %arg6[%c0_6, %c0_7], %7 {strides = array<i32>} : memref<56x128xf32, #tpu.memory_space<vmem>>, vector<56x128xf32>,
    %c7_i32 = arith.constant 7 : i32
    %9 = arith.cmpi eq, %arg1, %c7_i32 : i32
    %10 = arith.extui %9 : i1 to i32
    %c0_i32_8 = arith.constant 0 : i32
    %11 = arith.cmpi ne, %10, %c0_i32_8 : i32
    scf.if %11 {
      %c0_9 = arith.constant 0 : index
      %c0_10 = arith.constant 0 : index
      %12 = vector.load %arg6[%c0_9, %c0_10] : memref<56x128xf32, #tpu.memory_space<vmem>>, vector<56x128xf32>
      %c0_11 = arith.constant 0 : index
      %c0_12 = arith.constant 0 : index
      %13 = vector.load %arg4[%c0_11, %c0_12] : memref<1x128xf32, #tpu.memory_space<vmem>>, vector<1x128xf32>
      %14 = vector.broadcast %13 : vector<1x128xf32> to vector<56x128xf32>
      %15 = arith.addf %12, %14 : vector<56x128xf32>
      %c0_13 = arith.constant 0 : index
      %c0_14 = arith.constant 0 : index
      %16 = vector.load %arg5[%c0_13, %c0_14] : memref<56x128xf32, #tpu.memory_space<vmem>>, vector<56x128xf32>
      tpu.vector_store %arg5[%c0_13, %c0_14], %15 {strides = array<i32>} : memref<56x128xf32, #tpu.memory_space<vmem>>, vector<56x128xf32>,
    } else {
    }
    return
  }
  func.func @transform_0(%arg0: i32, %arg1: i32) -> (i32, i32) {
    %c0_i32 = arith.constant 0 : i32
    return %arg0, %arg1 : i32, i32
  }
  func.func @transform_1(%arg0: i32, %arg1: i32) -> (i32, i32) {
    %c0_i32 = arith.constant 0 : i32
    %c0_i32_0 = arith.constant 0 : i32
    return %arg1, %c0_i32 : i32, i32
  }
  func.func @transform_2(%arg0: i32, %arg1: i32) -> (i32, i32) {
    %c0_i32 = arith.constant 0 : i32
    %c0_i32_0 = arith.constant 0 : i32
    %c0_i32_1 = arith.constant 0 : i32
    return %c0_i32, %c0_i32_0 : i32, i32
  }
  func.func @transform_3(%arg0: i32, %arg1: i32) -> (i32, i32) {
    %c0_i32 = arith.constant 0 : i32
    %c0_i32_0 = arith.constant 0 : i32
    return %arg0, %c0_i32 : i32, i32
  }
}

</mosaic_0001>

<bundles_post_ra>
// kernel: fwd.5
= control target key start
LH: loop header
LB: loop body
LE: loop exit
PB: predicated region body
PF: predicated region fallthrough
CT: control target
= control target key end

     0   :  { %v834_v0 = vmov 0.0   ;;  %vm835_vm0 = vmmov 0   ;;  %s1010_s1 = inlined_call_operand.vmem [shape: bf16[128,128], index: 1, kind: input, shape index: {}]   ;;  %s1011_s0 = inlined_call_operand.vmem [shape: bf16[168,128], index: 0, kind: input, shape index: {}]   ;;  %s1012_s2 = inlined_call_operand.vmem [shape: f32[1,128], index: 2, kind: input, shape index: {}]   ;;  %s1013_s3 = inlined_call_operand.vmem [shape: bf16[168,128], index: 3, kind: output, shape index: {}]  }
   0x1   :  { %737 = vmatprep.subr.bf16.mxu0 %v834_v0  ;;  %v815_v1 = vld [vmem:[%s1010_s1 + $0x38] sm:$0xff]   ;;  %797 = vmatprep.subr.bf16.mxu1 %v834_v0  ;;  %v816_v2 = vld [vmem:[%s1010_s1 + $0x30] sm:$0xff]   ;;  %v817_v3 = vld [vmem:[%s1010_s1 + $0x28] sm:$0xff]  }
   0x2   :  { %753 = vmatprep.mubr.msk.bf16.mxu0 %vm835_vm0, %v834_v0  ;;  %777 = vmatprep.mubr.msk.bf16.mxu1 %vm835_vm0, %v834_v0  ;;  %v818_v4 = vld [vmem:[%s1010_s1 + $0x20] sm:$0xff]   ;;  %v819_v5 = vld [vmem:[%s1010_s1 + $0x18] sm:$0xff]   ;;  %v820_v6 = vld [vmem:[%s1010_s1 + $0x10] sm:$0xff]  }
   0x3   :  { %738 = vmatpush3.bf16.msra.mxu0 %v815_v1  ;;  %805 = vmatpush3.bf16.msra.mxu1 %v815_v1  ;;  %v821_v7 = vld [vmem:[%s1010_s1 + $0x8] sm:$0xff]   ;;  %v822_v8 = vld [vmem:[%s1010_s1] sm:$0xff]   ;;  %v824_v10 = vld [vmem:[%s1011_s0 + $0x30] sm:$0xff]  }
   0x4   :  { %739 = vmatprep.subr.bf16.mxu0 %v834_v0  ;;  %798 = vmatprep.subr.bf16.mxu1 %v834_v0  ;;  %v823_v9 = vld [vmem:[%s1011_s0] sm:$0xff]   ;;  %v825_v11 = vld [vmem:[%s1011_s0 + $0x8] sm:$0xff]   ;;  %v826_v12 = vld [vmem:[%s1011_s0 + $0x38] sm:$0xff]  }
   0x5   :  { %v827_v13 = vld [vmem:[%s1011_s0 + $0x10] sm:$0xff]   ;;  %v828_v14 = vld [vmem:[%s1011_s0 + $0x40] sm:$0xff]   ;;  %v829_v15 = vld [vmem:[%s1011_s0 + $0x18] sm:$0xff]  }
   0x6   :  { %v830_v16 = vld [vmem:[%s1011_s0 + $0x48] sm:$0xff]   ;;  %v831_v17 = vld [vmem:[%s1011_s0 + $0x20] sm:$0xff]   ;;  %v832_v18 = vld [vmem:[%s1011_s0 + $0x50] ss:$0 sps:$4 sm:$0xff]  }
   0x7   :  { %740 = vmatpush3.bf16.msra.mxu0 %v816_v2  ;;  %806 = vmatpush3.bf16.msra.mxu1 %v816_v2  ;;  %v833_v19 = vld [vmem:[%s1011_s0 + $0x28] sm:$0xff]   ;;  %v954_v20 = vld [vmem:[%s1012_s2] ss:$0 sm:$0xff] }
   0x8   :  { %741 = vmatprep.subr.bf16.mxu0 %v834_v0  ;;  %799 = vmatprep.subr.bf16.mxu1 %v834_v0 }
   0xb   :  { %742 = vmatpush3.bf16.msra.mxu0 %v817_v3  ;;  %807 = vmatpush3.bf16.msra.mxu1 %v817_v3 }
   0xc   :  { %743 = vmatprep.subr.bf16.mxu0 %v834_v0  ;;  %800 = vmatprep.subr.bf16.mxu1 %v834_v0 }
   0xf   :  { %744 = vmatpush3.bf16.msra.mxu0 %v818_v4  ;;  %808 = vmatpush3.bf16.msra.mxu1 %v818_v4 }
  0x10   :  { %745 = vmatprep.subr.bf16.mxu0 %v834_v0  ;;  %801 = vmatprep.subr.bf16.mxu1 %v834_v0 }
  0x13   :  { %746 = vmatpush3.bf16.msra.mxu0 %v819_v5  ;;  %809 = vmatpush3.bf16.msra.mxu1 %v819_v5 }
  0x14   :  { %747 = vmatprep.subr.bf16.mxu0 %v834_v0  ;;  %802 = vmatprep.subr.bf16.mxu1 %v834_v0 }
  0x17   :  { %748 = vmatpush3.bf16.msra.mxu0 %v820_v6  ;;  %810 = vmatpush3.bf16.msra.mxu1 %v820_v6 }
  0x18   :  { %749 = vmatprep.subr.bf16.mxu0 %v834_v0  ;;  %803 = vmatprep.subr.bf16.mxu1 %v834_v0 }
  0x1b   :  { %750 = vmatpush3.bf16.msra.mxu0 %v821_v7  ;;  %811 = vmatpush3.bf16.msra.mxu1 %v821_v7 }
  0x1c   :  { %751 = vmatprep.subr.bf16.mxu0 %v834_v0  ;;  %804 = vmatprep.subr.bf16.mxu1 %v834_v0 }
  0x1f   :  { %752 = vmatpush3.bf16.msra.mxu0 %v822_v8  ;;  %812 = vmatpush3.bf16.msra.mxu1 %v822_v8 }
  0x22   :  { %754 = vmatmul.mubr.bf16.vlgmr.msra.gmra.mxu0 %v823_v9  ;;  %778 = vmatmul.mubr.bf16.vlgmr.msra.gmra.mxu1 %v824_v10 }
  0x23   :  { %757 = vmatprep.mubr.msk.bf16.mxu0 %vm835_vm0, %v834_v0  ;;  %781 = vmatprep.mubr.msk.bf16.mxu1 %vm835_vm0, %v834_v0 }
  0x2a   :  { %758 = vmatmul.mubr.bf16.gmra.mxu0 %v825_v11  ;;  %782 = vmatmul.mubr.bf16.gmra.mxu1 %v826_v12 }
  0x2b   :  { %761 = vmatprep.mubr.msk.bf16.mxu0 %vm835_vm0, %v834_v0  ;;  %785 = vmatprep.mubr.msk.bf16.mxu1 %vm835_vm0, %v834_v0 }
  0x32   :  { %762 = vmatmul.mubr.bf16.gmra.mxu0 %v827_v13  ;;  %786 = vmatmul.mubr.bf16.gmra.mxu1 %v828_v14 }
  0x33   :  { %765 = vmatprep.mubr.msk.bf16.mxu0 %vm835_vm0, %v834_v0  ;;  %789 = vmatprep.mubr.msk.bf16.mxu1 %vm835_vm0, %v834_v0 }
  0x3a   :  { %766 = vmatmul.mubr.bf16.gmra.mxu0 %v829_v15  ;;  %790 = vmatmul.mubr.bf16.gmra.mxu1 %v830_v16 }
  0x3b   :  { %769 = vmatprep.mubr.msk.bf16.mxu0 %vm835_vm0, %v834_v0  ;;  %793 = vmatprep.mubr.msk.bf16.mxu1 %vm835_vm0, %v834_v0 }
  0x42   :  { %770 = vmatmul.mubr.bf16.gmra.mxu0 %v831_v17  ;;  %794 = vmatmul.mubr.bf16.gmra.mxu1 %v832_v18 }
  0x43   :  { %773 = vmatprep.mubr.msk.bf16.mxu0 %vm835_vm0, %v834_v0 }
  0x4a   :  { %774 = vmatmul.mubr.bf16.gmra.mxu0 %v833_v19 }
  0xe2   :  { %v244_v21 = vpop.f32.mrf.mxu0  ;;  %v292_v22 = vpop.f32.mrf.mxu1 }
  0xe3   :  { %v403_v23 = vadd.f32 %v954_v20, %v244_v21  ;;  %v415_v24 = vadd.f32 %v954_v20, %v292_v22 }
  0xe4   :  { %v755_v25 = vpop.f32.mrf.mxu0  ;;  %v779_v26 = vpop.f32.mrf.mxu1 }
  0xe5   :  { %vm436_vm1 = vcmp.ge.f32.partialorder %v415_v24, 0.0  ;;  %v457_v27 = vmul.f32 0.2, %v415_v24  ;;  %v445_v28 = vmul.f32 0.2, %v403_v23  ;;  %vm424_vm2 = vcmp.ge.f32.partialorder %v403_v23, 0.0 }
  0xe6   :  { %v247_v29 = vpop.f32.mrf.mxu0  ;;  %v295_v30 = vpop.f32.mrf.mxu1 }
  0xe7   :  { %v404_v31 = vadd.f32 %v954_v20, %v247_v29  ;;  %v416_v32 = vadd.f32 %v954_v20, %v295_v30  ;;  %v478_v34 = vsel %vm436_vm1, %v415_v24, %v457_v27  ;;  %v466_v38 = vsel %vm424_vm2, %v403_v23, %v445_v28 }
  0xe8   :  { %v756_v33 = vpop.f32.mrf.mxu0  ;;  %v780_v35 = vpop.f32.mrf.mxu1 }
  0xe9   :  { %vm425_vm3 = vcmp.ge.f32.partialorder %v404_v31, 0.0  ;;  %v446_v36 = vmul.f32 0.2, %v404_v31  ;;  %vm437_vm4 = vcmp.ge.f32.partialorder %v416_v32, 0.0  ;;  %v458_v37 = vmul.f32 0.2, %v416_v32 }
  0xea   :  { %v252_v39 = vpop.f32.mrf.mxu0  ;;  %v300_v40 = vpop.f32.mrf.mxu1 }
  0xeb   :  { %v467_v41 = vsel %vm425_vm3, %v404_v31, %v446_v36  ;;  %v405_v42 = vadd.f32 %v954_v20, %v252_v39  ;;  %v479_v43 = vsel %vm437_vm4, %v416_v32, %v458_v37  ;;  %v417_v44 = vadd.f32 %v954_v20, %v300_v40 }
  0xec   :  { %v662_v45 = vpack.c.bf16 %v467_v41, %v466_v38  ;;  %v759_v46 = vpop.f32.mrf.mxu0  ;;  %v692_v47 = vpack.c.bf16 %v479_v43, %v478_v34  ;;  %v783_v48 = vpop.f32.mrf.mxu1 }
  0xed   :  { %vm438_vm5 = vcmp.ge.f32.partialorder %v417_v44, 0.0  ;;  %v459_v49 = vmul.f32 0.2, %v417_v44  ;;  %v447_v50 = vmul.f32 0.2, %v405_v42  ;;  %vm426_vm6 = vcmp.ge.f32.partialorder %v405_v42, 0.0 }
  0xee   :  { %663 = vst [vmem:[%s1013_s3] sm:$0xff] %v662_v45   ;;  %714 = vst [vmem:[%s1013_s3 + $0x30] sm:$0xff] %v692_v47   ;;  %v255_v51 = vpop.f32.mrf.mxu0  ;;  %v303_v52 = vpop.f32.mrf.mxu1 }
  0xef   :  { %v406_v53 = vadd.f32 %v954_v20, %v255_v51  ;;  %v418_v54 = vadd.f32 %v954_v20, %v303_v52  ;;  %v480_v56 = vsel %vm438_vm5, %v417_v44, %v459_v49  ;;  %v468_v60 = vsel %vm426_vm6, %v405_v42, %v447_v50 }
  0xf0   :  { %v760_v55 = vpop.f32.mrf.mxu0  ;;  %v784_v57 = vpop.f32.mrf.mxu1 }
  0xf1   :  { %vm427_vm7 = vcmp.ge.f32.partialorder %v406_v53, 0.0  ;;  %v448_v58 = vmul.f32 0.2, %v406_v53  ;;  %vm439_vm8 = vcmp.ge.f32.partialorder %v418_v54, 0.0  ;;  %v460_v59 = vmul.f32 0.2, %v418_v54 }
  0xf2   :  { %v260_v61 = vpop.f32.mrf.mxu0  ;;  %v308_v62 = vpop.f32.mrf.mxu1 }
  0xf3   :  { %v469_v63 = vsel %vm427_vm7, %v406_v53, %v448_v58  ;;  %v407_v0 = vadd.f32 %v954_v20, %v260_v61  ;;  %v481_v1 = vsel %vm439_vm8, %v418_v54, %v460_v59  ;;  %v419_v2 = vadd.f32 %v954_v20, %v308_v62 }
  0xf4   :  { %v667_v3 = vpack.c.bf16 %v469_v63, %v468_v60  ;;  %v763_v4 = vpop.f32.mrf.mxu0  ;;  %v697_v5 = vpack.c.bf16 %v481_v1, %v480_v56  ;;  %v787_v6 = vpop.f32.mrf.mxu1 }
  0xf5   :  { %vm440_vm9 = vcmp.ge.f32.partialorder %v419_v2, 0.0  ;;  %v461_v7 = vmul.f32 0.2, %v419_v2  ;;  %v449_v8 = vmul.f32 0.2, %v407_v0  ;;  %vm428_vm10 = vcmp.ge.f32.partialorder %v407_v0, 0.0 }
  0xf6   :  { %709 = vst [vmem:[%s1013_s3 + $0x8] sm:$0xff] %v667_v3   ;;  %715 = vst [vmem:[%s1013_s3 + $0x38] sm:$0xff] %v697_v5   ;;  %v263_v9 = vpop.f32.mrf.mxu0  ;;  %v311_v10 = vpop.f32.mrf.mxu1 }
  0xf7   :  { %v408_v11 = vadd.f32 %v954_v20, %v263_v9  ;;  %v420_v12 = vadd.f32 %v954_v20, %v311_v10  ;;  %v482_v14 = vsel %vm440_vm9, %v419_v2, %v461_v7  ;;  %v470_v18 = vsel %vm428_vm10, %v407_v0, %v449_v8 }
  0xf8   :  { %v764_v13 = vpop.f32.mrf.mxu0  ;;  %v788_v15 = vpop.f32.mrf.mxu1 }
  0xf9   :  { %vm429_vm11 = vcmp.ge.f32.partialorder %v408_v11, 0.0  ;;  %v450_v16 = vmul.f32 0.2, %v408_v11  ;;  %vm441_vm12 = vcmp.ge.f32.partialorder %v420_v12, 0.0  ;;  %v462_v17 = vmul.f32 0.2, %v420_v12 }
  0xfa   :  { %v268_v19 = vpop.f32.mrf.mxu0  ;;  %v316_v21 = vpop.f32.mrf.mxu1 }
  0xfb   :  { %v471_v22 = vsel %vm429_vm11, %v408_v11, %v450_v16  ;;  %v409_v23 = vadd.f32 %v954_v20, %v268_v19  ;;  %v483_v24 = vsel %vm441_vm12, %v420_v12, %v462_v17  ;;  %v421_v25 = vadd.f32 %v954_v20, %v316_v21 }
  0xfc   :  { %v672_v26 = vpack.c.bf16 %v471_v22, %v470_v18  ;;  %v767_v27 = vpop.f32.mrf.mxu0  ;;  %v702_v28 = vpack.c.bf16 %v483_v24, %v482_v14  ;;  %v791_v29 = vpop.f32.mrf.mxu1 }
  0xfd   :  { %vm442_vm13 = vcmp.ge.f32.partialorder %v421_v25, 0.0  ;;  %v463_v30 = vmul.f32 0.2, %v421_v25  ;;  %v451_v31 = vmul.f32 0.2, %v409_v23  ;;  %vm430_vm14 = vcmp.ge.f32.partialorder %v409_v23, 0.0 }
  0xfe   :  { %710 = vst [vmem:[%s1013_s3 + $0x10] sm:$0xff] %v672_v26   ;;  %716 = vst [vmem:[%s1013_s3 + $0x40] sm:$0xff] %v702_v28   ;;  %v271_v32 = vpop.f32.mrf.mxu0  ;;  %v319_v33 = vpop.f32.mrf.mxu1 }
  0xff   :  { %v410_v34 = vadd.f32 %v954_v20, %v271_v32  ;;  %v422_v35 = vadd.f32 %v954_v20, %v319_v33  ;;  %v484_v37 = vsel %vm442_vm13, %v421_v25, %v463_v30  ;;  %v472_v41 = vsel %vm430_vm14, %v409_v23, %v451_v31 }
 0x100   :  { %v768_v36 = vpop.f32.mrf.mxu0  ;;  %v792_v38 = vpop.f32.mrf.mxu1 }
 0x101   :  { %vm431_vm15 = vcmp.ge.f32.partialorder %v410_v34, 0.0  ;;  %v452_v39 = vmul.f32 0.2, %v410_v34  ;;  %vm443_vm0 = vcmp.ge.f32.partialorder %v422_v35, 0.0  ;;  %v464_v40 = vmul.f32 0.2, %v422_v35 }
 0x102   :  { %v276_v42 = vpop.f32.mrf.mxu0  ;;  %v324_v43 = vpop.f32.mrf.mxu1 }
 0x103   :  { %v473_v44 = vsel %vm431_vm15, %v410_v34, %v452_v39  ;;  %v411_v45 = vadd.f32 %v954_v20, %v276_v42  ;;  %v485_v46 = vsel %vm443_vm0, %v422_v35, %v464_v40  ;;  %v423_v47 = vadd.f32 %v954_v20, %v324_v43 }
 0x104   :  { %v677_v48 = vpack.c.bf16 %v473_v44, %v472_v41  ;;  %v771_v49 = vpop.f32.mrf.mxu0  ;;  %v707_v50 = vpack.c.bf16 %v485_v46, %v484_v37  ;;  %v795_v51 = vpop.f32.mrf.mxu1 }
 0x105   :  { %vm444_vm1 = vcmp.ge.f32.partialorder %v423_v47, 0.0  ;;  %v465_v52 = vmul.f32 0.2, %v423_v47  ;;  %v453_v55 = vmul.f32 0.2, %v411_v45  ;;  %vm432_vm2 = vcmp.ge.f32.partialorder %v411_v45, 0.0 }
 0x106   :  { %711 = vst [vmem:[%s1013_s3 + $0x18] sm:$0xff] %v677_v48   ;;  %717 = vst [vmem:[%s1013_s3 + $0x48] sm:$0xff] %v707_v50   ;;  %v279_v53 = vpop.f32.mrf.mxu0  ;;  %v327_v54 = vpop.f32.mrf.mxu1 }
 0x107   :  { %v412_v56 = vadd.f32 %v954_v20, %v279_v53  ;;  %v486_v57 = vsel %vm444_vm1, %v423_v47, %v465_v52  ;;  %v474_v63 = vsel %vm432_vm2, %v411_v45, %v453_v55 }
 0x108   :  { %v772_v58 = vpop.f32.mrf.mxu0  ;;  %v658_v59 = vpack.c.bf16 %v486_v57, %v486_v57  ;;  %v796_v60 = vpop.f32.mrf.mxu1 }
 0x109   :  { %vm433_vm3 = vcmp.ge.f32.partialorder %v412_v56, 0.0  ;;  %v454_v61 = vmul.f32 0.2, %v412_v56 }
 0x10a   :  { %592 = vst [vmem:[%s1013_s3 + $0x50] sm:$0xf] %v658_v59  ;;  %v284_v62 = vpop.f32.mrf.mxu0 }
 0x10b   :  { %v475_v0 = vsel %vm433_vm3, %v412_v56, %v454_v61  ;;  %v413_v1 = vadd.f32 %v954_v20, %v284_v62 }
 0x10c   :  { %v682_v2 = vpack.c.bf16 %v475_v0, %v474_v63  ;;  %v775_v3 = vpop.f32.mrf.mxu0 }
 0x10d   :  { %v455_v5 = vmul.f32 0.2, %v413_v1  ;;  %vm434_vm4 = vcmp.ge.f32.partialorder %v413_v1, 0.0 }
 0x10e   :  { %712 = vst [vmem:[%s1013_s3 + $0x20] sm:$0xff] %v682_v2   ;;  %v287_v4 = vpop.f32.mrf.mxu0 }
 0x10f   :  { %v414_v6 = vadd.f32 %v954_v20, %v287_v4  ;;  %v476_v9 = vsel %vm434_vm4, %v413_v1, %v455_v5 }
 0x110   :  { %v776_v7 = vpop.f32.mrf.mxu0 }
 0x111   :  { %vm435_vm5 = vcmp.ge.f32.partialorder %v414_v6, 0.0  ;;  %v456_v8 = vmul.f32 0.2, %v414_v6 }
 0x113   :  { %v477_v10 = vsel %vm435_vm5, %v414_v6, %v456_v8 }
 0x114   :  { %v687_v11 = vpack.c.bf16 %v477_v10, %v476_v9 }
 0x116   :  { %713 = vst [vmem:[%s1013_s3 + $0x28] sm:$0xff] %v687_v11  }

// kernel: fwd.7
= control target key start
LH: loop header
LB: loop body
LE: loop exit
PB: predicated region body
PF: predicated region fallthrough
CT: control target
= control target key end

     0   :  { %s1045_s12 = smov 0   ;;  %s1047_s13 = smov 0   ;;  %s1186_s0 = inlined_call_operand.vmem [shape: bf16[2,16,1024], index: 0, kind: input, shape index: {}]   ;;  %s1187_s1 = inlined_call_operand.vmem [shape: bf16[1024,128], index: 1, kind: input, shape index: {}]   ;;  %s1188_s2 = inlined_call_operand.vmem [shape: f32[1,128], index: 2, kind: input, shape index: {}]   ;;  %s1189_s3 = inlined_call_operand.vmem [shape: bf16[2,16,128], index: 3, kind: output, shape index: {}]  }
   0x1   :  { %s1049_s14 = smov 0   ;;  %s1051_s15 = smov 0  }
   0x2   :  { %s1053_s16 = smov 0   ;;  %s1055_s17 = smov 0  }
   0x3   :  { %s1057_s18 = smov 0  }
   0x4 LB: > { %s22_s19 = sadd.s32 1, %s1014_s16  ;;  %s25_s20 = sadd.s32 1, %s1018_s17  ;;  %s1022_s18 = sphi %s1057_s18, %s13_s18   ;;  %s1018_s17 = sphi %s1055_s17, %s1195_s17   ;;  %s1014_s16 = sphi %s1053_s16, %s1194_s16   ;;  %s1010_s15 = sphi %s1051_s15, %s1193_s15   ;;  %s1006_s14 = sphi %s1049_s14, %s1192_s14   ;;  %s1002_s13 = sphi %s1047_s13, %s1191_s13   ;;  %s998_s12 = sphi %s1045_s12, %s1190_s12  }
   0x5   : > { %p23_p0 = scmp.ge.s32.totalorder %s22_s19, 2  ;;  %p41_p1 = scmp.ne.s32.totalorder %s1002_s13, %s998_s12 }
   0x6   : > { %p42_p2 = scmp.eq.s32.totalorder %s1022_s18, 0  ;;  %s34_s24 = sadd.s32 1, %s1002_s13 }
   0x7   : > { %s1197_s19 = smov (%p23_p0, %s22_s19), 0  ;;  %s1199_s20 = smov (!%p23_p0, %s25_s20), %s1018_s17 }
   0x8   : > { %p43_p3 = por %p42_p2, %p41_p1  ;;  %p27_p4 = scmp.ge.s32.totalorder %s1199_s20, 2 }
   0x9   : > { %s30_s21 = ssub.s32 %s1014_s16, %s1197_s19  ;;  %p765_p6 = scmp.ge.s32.totalorder %s1022_s18, 4 }
   0xa   : > { %s1201_s20 = smov (%p27_p4, %s1199_s20), 0 }
   0xb   : > { %s29_s22 = ssub.s32 %s1018_s17, %s1201_s20  ;;  %143 = sbr.rel (%p765_p6) target bundleno = 25 (0x19), region = 20 }
   0xc   : > { %s31_s23 = sor.u32 %s30_s21, %s29_s22 }
   0xd   : > { %p32_p5 = scmp.eq.s32.totalorder %s31_s23, 0 }
   0xf   : > { %s1096_s25 = scalar_select %p32_p5, %s1002_s13, %s34_s24  }
  0x10   : > { %146 = sbr.rel (!%p43_p3) target bundleno = 25 (0x19), region = 24  ;;  %s148_s26 = sand.u32 (%p43_p3), 1, %s1002_s13  }
  0x11   : > { %s767_s27 = sshll.u32 (%p43_p3), %s1014_s16, 2  ;;  %s766_s28 = sshll.u32 (%p43_p3), %s148_s26, 5 }
  0x12   : > { %s768_s29 = sshll.u32 (%p43_p3), %s1018_s17, 4  ;;  %s150_s8 = scalar_lea.vmem (%p43_p3), [#allocation3], %s766_s28 }
  0x13   : > { %s153_s30 = sadd.s32 (%p43_p3), %s768_s29, %s767_s27 }
  0x14   : > { %s769_s4 = sshll.u32 (%p43_p3), %s153_s30, 2 }
  0x15   : > { %s155_s7 = scalar_lea.vmem %s1186_s0, %s769_s4 }
  0x16   : > { %v168_v0 = vld [vmem:[%s155_s7] sm:$0xff]  ;;  %v170_v1 = vld [vmem:[%s155_s7 + $0x8] sm:$0xff] }
  0x17   : > { %v172_v2 = vld [vmem:[%s155_s7 + $0x20] sm:$0xff]  ;;  %169 = vst [vmem:[%s150_s8] sm:$0xff] %v168_v0  ;;  %171 = vst [vmem:[%s150_s8 + $0x8] sm:$0xff] %v170_v1  ;;  %v174_v3 = vld [vmem:[%s155_s7 + $0x28] sm:$0xff] }
  0x18   : > { %173 = vst [vmem:[%s150_s8 + $0x10] sm:$0xff] %v172_v2  ;;  %175 = vst [vmem:[%s150_s8 + $0x18] sm:$0xff] %v174_v3 }
  0x19 PF: > { %p770_p7 = scmp.ge.s32.totalorder %s1022_s18, 1  ;;  %p189_p8 = scmp.lt.s32.totalorder %s1022_s18, 5 }
  0x1b   : > { %p190_p9 = pnand %p770_p7, %p189_p8 }
  0x1c   : > { %s196_s9 = sand.u32 (!%p190_p9), 1, %s998_s12   ;;  %s772_s10 = sshll.u32 (!%p190_p9), %s1006_s14, 6 }
  0x1d   : > { %193 = sbr.rel (%p190_p9) target bundleno = 356 (0x164), region = 51  ;;  %s771_s11 = sshll.u32 (!%p190_p9), %s196_s9, 5 }
  0x1e   : > { %p226_p10 = scmp.lt.s32.totalorder (!%p190_p9), %s772_s10, 127  ;;  %p231_p11 = scmp.lt.s32.totalorder (!%p190_p9), %s1010_s15, 1 }
  0x1f   : > { %s1121_s30 = scalar_lea.vmem (!%p190_p9), [#allocation3], %s771_s11  ;;  %p776_p12 = scmp.ne.s32.totalorder (!%p190_p9), %s1006_s14, 0 }
  0x22   : > { %s1203_s10 = smov (!%p226_p10, %s772_s10), 127  ;;  %s1205_s15 = smov (!%p231_p11, %s1010_s15), 1 }
  0x23   : > { %s773_s21 = sshll.u32 %s1203_s10, 2  ;;  %s819_s26 = sshll.u32 %s1205_s15, 3 }
  0x24   : > { %s1114_s24 = scalar_lea.vmem %s1187_s1, %s773_s21  ;;  %s1119_s29 = scalar_lea.vmem %s1189_s3, %s819_s26 }
  0x25   : > { %240 = sbr.rel (%p776_p12) target bundleno = 44 (0x2c), region = 59 }
  0x2a   : > { %v1024_v4 = vmov 0.0  }
  0x2b   : > { %241 = vst [vmem:[#allocation2] sm:$0xff] %v1024_v4  ;;  %242 = vst [vmem:[#allocation2 + $0x8] sm:$0xff] %v1024_v4 }
  0x2c PF: > { %v928_v5 = vld [vmem:[%s1114_s24 + $0x78] sm:$0xff]   ;;  %v932_v9 = vld [vmem:[%s1114_s24 + $0x70] sm:$0xff]   ;;  %v936_v13 = vld [vmem:[%s1114_s24 + $0x68] sm:$0xff]   ;;  %p813_p13 = scmp.ne.s32.totalorder %s1006_s14, 1 }
  0x2d   : > { %v929_v6 = vld [vmem:[%s1114_s24 + $0xf8] sm:$0xff]   ;;  %827 = vmatprep.subr.bf16.mxu0 %v928_v5  ;;  %v933_v10 = vld [vmem:[%s1114_s24 + $0xf0] sm:$0xff]   ;;  %v937_v14 = vld [vmem:[%s1114_s24 + $0xe8] sm:$0xff]  }
  0x2e   : > { %v930_v7 = vld [vmem:[%s1114_s24 + $0x38] sm:$0xff]   ;;  %849 = vmatprep.subr.bf16.mxu1 %v929_v6  ;;  %v934_v11 = vld [vmem:[%s1114_s24 + $0x30] sm:$0xff]   ;;  %v938_v15 = vld [vmem:[%s1114_s24 + $0x28] sm:$0xff]  }
  0x2f   : > { %v931_v8 = vld [vmem:[%s1114_s24 + $0xb8] sm:$0xff]   ;;  %828 = vmatpush3.bf16.msra.mxu0 %v930_v7  ;;  %v935_v12 = vld [vmem:[%s1114_s24 + $0xb0] sm:$0xff]   ;;  %v939_v16 = vld [vmem:[%s1114_s24 + $0xa8] sm:$0xff]  }
  0x30   : > { %850 = vmatpush3.bf16.msra.mxu1 %v931_v8  ;;  %829 = vmatprep.subr.bf16.mxu0 %v932_v9  ;;  %v940_v17 = vld [vmem:[%s1114_s24 + $0x60] sm:$0xff]   ;;  %v944_v21 = vld [vmem:[%s1114_s24 + $0x58] sm:$0xff]   ;;  %v948_v25 = vld [vmem:[%s1114_s24 + $0x50] sm:$0xff]  }
  0x31   : > { %851 = vmatprep.subr.bf16.mxu1 %v933_v10  ;;  %v941_v18 = vld [vmem:[%s1114_s24 + $0xe0] sm:$0xff]   ;;  %v945_v22 = vld [vmem:[%s1114_s24 + $0xd8] sm:$0xff]   ;;  %v949_v26 = vld [vmem:[%s1114_s24 + $0xd0] sm:$0xff]  }
  0x32   : > { %v942_v19 = vld [vmem:[%s1114_s24 + $0x20] sm:$0xff]   ;;  %v946_v23 = vld [vmem:[%s1114_s24 + $0x18] sm:$0xff]   ;;  %v950_v27 = vld [vmem:[%s1114_s24 + $0x10] sm:$0xff]  }
  0x33   : > { %830 = vmatpush3.bf16.msra.mxu0 %v934_v11  ;;  %v943_v20 = vld [vmem:[%s1114_s24 + $0xa0] sm:$0xff]   ;;  %v947_v24 = vld [vmem:[%s1114_s24 + $0x98] sm:$0xff]   ;;  %v951_v28 = vld [vmem:[%s1114_s24 + $0x90] sm:$0xff]  }
  0x34   : > { %852 = vmatpush3.bf16.msra.mxu1 %v935_v12  ;;  %831 = vmatprep.subr.bf16.mxu0 %v936_v13  ;;  %v952_v29 = vld [vmem:[%s1114_s24 + $0x48] sm:$0xff]   ;;  %v956_v33 = vld [vmem:[%s1114_s24 + $0x40] sm:$0xff]  }
  0x35   : > { %853 = vmatprep.subr.bf16.mxu1 %v937_v14  ;;  %v953_v30 = vld [vmem:[%s1114_s24 + $0xc8] sm:$0xff]   ;;  %v957_v34 = vld [vmem:[%s1114_s24 + $0xc0] sm:$0xff]  }
  0x36   : > { %v954_v31 = vld [vmem:[%s1114_s24 + $0x8] sm:$0xff]   ;;  %v958_v35 = vld [vmem:[%s1114_s24] sm:$0xff]  }
  0x37   : > { %832 = vmatpush3.bf16.msra.mxu0 %v938_v15  ;;  %v955_v32 = vld [vmem:[%s1114_s24 + $0x88] sm:$0xff]   ;;  %v959_v36 = vld [vmem:[%s1114_s24 + $0x80] sm:$0xff]  }
  0x38   : > { %854 = vmatpush3.bf16.msra.mxu1 %v939_v16  ;;  %833 = vmatprep.subr.bf16.mxu0 %v940_v17  ;;  %v960_v37 = vld [vmem:[%s1121_s30] ss:$16 sps:$4 sm:$0xff]   ;;  %v962_v38 = vld [vmem:[%s1121_s30 + $0x4] ss:$16 sps:$4 sm:$0xff]   ;;  %v963_v39 = vld [vmem:[%s1121_s30 + $0x8] ss:$16 sps:$4 sm:$0xff]  }
  0x39   : > { %855 = vmatprep.subr.bf16.mxu1 %v941_v18  ;;  %v965_v40 = vld [vmem:[%s1121_s30 + $0xc] ss:$16 sps:$4 sm:$0xff]   ;;  %557 = vmatprep.mubr.bf16.mxu0 %v962_v38  ;;  %v243_v48 = vld [vmem:[#allocation2] sm:$0xff] }
  0x3a   : > { %598 = vmatprep.mubr.bf16.mxu1 %v965_v40  ;;  %v244_v56 = vld [vmem:[#allocation2 + $0x8] sm:$0xff] }
  0x3b   : > { %834 = vmatpush3.bf16.msra.mxu0 %v942_v19 }
  0x3c   : > { %856 = vmatpush3.bf16.msra.mxu1 %v943_v20  ;;  %835 = vmatprep.subr.bf16.mxu0 %v944_v21 }
  0x3d   : > { %857 = vmatprep.subr.bf16.mxu1 %v945_v22 }
  0x3f   : > { %836 = vmatpush3.bf16.msra.mxu0 %v946_v23 }
  0x40   : > { %858 = vmatpush3.bf16.msra.mxu1 %v947_v24  ;;  %837 = vmatprep.subr.bf16.mxu0 %v948_v25 }
  0x41   : > { %859 = vmatprep.subr.bf16.mxu1 %v949_v26 }
  0x43   : > { %838 = vmatpush3.bf16.msra.mxu0 %v950_v27 }
  0x44   : > { %860 = vmatpush3.bf16.msra.mxu1 %v951_v28  ;;  %839 = vmatprep.subr.bf16.mxu0 %v952_v29 }
  0x45   : > { %861 = vmatprep.subr.bf16.mxu1 %v953_v30 }
  0x47   : > { %840 = vmatpush3.bf16.msra.mxu0 %v954_v31 }
  0x48   : > { %862 = vmatpush3.bf16.msra.mxu1 %v955_v32  ;;  %841 = vmatprep.subr.bf16.mxu0 %v956_v33 }
  0x49   : > { %863 = vmatprep.subr.bf16.mxu1 %v957_v34 }
  0x4b   : > { %842 = vmatpush3.bf16.msra.mxu0 %v958_v35 }
  0x4c   : > { %864 = vmatpush3.bf16.msra.mxu1 %v959_v36 }
  0x4e   : > { %558 = vmatmul.mubr.bf16.vlgmr.msra.gmra.mxu0 %v960_v37 }
  0x4f   : > { %599 = vmatmul.mubr.bf16.vlgmr.msra.gmra.mxu1 %v963_v39 }
 0x10e   : > { %v843_v41 = vpop.f32.mrf.mxu0 }
 0x10f   : > { %v865_v42 = vpop.f32.mrf.mxu1 }
 0x110   : > { %v844_v43 = vpop.f32.mrf.mxu0 }
 0x111   : > { %v845_v44 = vadd.f32 %v844_v43, %v843_v41  ;;  %v866_v45 = vpop.f32.mrf.mxu1 }
 0x112   : > { %v867_v46 = vadd.f32 %v866_v45, %v865_v42  ;;  %v846_v47 = vpop.f32.mrf.mxu0 }
 0x113   : > { %v868_v49 = vpop.f32.mrf.mxu1 }
 0x114   : > { %v601_v50 = vadd.f32 %v867_v46, %v845_v44  ;;  %v847_v51 = vpop.f32.mrf.mxu0 }
 0x115   : > { %v848_v52 = vadd.f32 %v847_v51, %v846_v47  ;;  %v869_v53 = vpop.f32.mrf.mxu1 }
 0x116   : > { %v607_v54 = vadd.f32 %v601_v50, %v243_v48  ;;  %v870_v55 = vadd.f32 %v869_v53, %v868_v49 }
 0x118   : > { %609 = vst [vmem:[#allocation2] sm:$0xff] %v607_v54  ;;  %v604_v57 = vadd.f32 %v870_v55, %v848_v52  ;;  %614 = sbr.rel (%p813_p13) target bundleno = 356 (0x164), region = 63 }
 0x11a   : > { %v608_v58 = vadd.f32 %v604_v57, %v244_v56 }
 0x11c   : > { %610 = vst [vmem:[#allocation2 + $0x8] sm:$0xff] %v608_v58 }
 0x11d   : > { %v814_v60 = vld [vmem:[%s1188_s2] ss:$0 sm:$0xff]  ;;  %v626_v61 = vlaneseq }
 0x11f   : > { %v615_v62 = vld [vmem:[#allocation2] sm:$0xff]  ;;  %v627_v63 = vshrl.u32 %v626_v61, 7 }
 0x120   : > { %v624_v1 = vadd.f32 %v814_v60, %v615_v62 }
 0x121   : > { %v628_v2 = vadd.s32 8, %v627_v63 }
 0x123   : > { %v616_v59 = vld [vmem:[#allocation2 + $0x8] sm:$0xff]  ;;  %vm630_vm0 = vcmp.lt.s32.totalorder %v628_v2, 9 }
 0x124   : > { %v625_v0 = vadd.f32 %v814_v60, %v616_v59 }
 0x126   : > { %v632_v3 = vsel %vm630_vm0, %v625_v0, 0.0 }
 0x127   : > { %v633_v4 = vadd.f32 %v632_v3, %v624_v1 }
 0x129   : > { %v634_v5 = vrot.slane %v633_v4, 4 }
 0x12b   : > { %v635_v6 = vadd.f32 %v634_v5, %v633_v4 }
 0x12d   : > { %v636_v7 = vrot.slane %v635_v6, 2 }
 0x12f   : > { %v637_v8 = vadd.f32 %v636_v7, %v635_v6 }
 0x131   : > { %v638_v9 = vrot.slane %v637_v8, 1 }
 0x133   : > { %v639_v10 = vadd.f32 %v638_v9, %v637_v8 }
 0x135   : > { %v640_v11 = vmul.f32 0.11111111, %v639_v10 }
 0x137   : > { %v641_v12 = vsub.f32 %v624_v1, %v640_v11  ;;  %v642_v13 = vsub.f32 %v625_v0, %v640_v11 }
 0x139   : > { %v644_v14 = vsel %vm630_vm0, %v642_v13, 0.0  ;;  %v645_v15 = vmul.f32 %v641_v12, %v641_v12 }
 0x13a   : > { %v646_v16 = vmul.f32 %v644_v14, %v644_v14 }
 0x13c   : > { %v647_v17 = vadd.f32 %v646_v16, %v645_v15 }
 0x13e   : > { %v648_v18 = vrot.slane %v647_v17, 4 }
 0x140   : > { %v649_v19 = vadd.f32 %v648_v18, %v647_v17 }
 0x142   : > { %v650_v20 = vrot.slane %v649_v19, 2 }
 0x144   : > { %v651_v21 = vadd.f32 %v650_v20, %v649_v19 }
 0x146   : > { %v652_v22 = vrot.slane %v651_v21, 1 }
 0x148   : > { %v653_v23 = vadd.f32 %v652_v22, %v651_v21 }
 0x14a   : > { %v654_v24 = vmul.f32 0.11111111, %v653_v23 }
 0x14c   : > { %v655_v25 = vadd.f32 1e-05, %v654_v24 }
 0x14e   : > { %966 = vrsqrt.f32 %v655_v25 }
 0x15b   : > { %v967_v26 = vpop.eup %966 }
 0x15c   : > { %v657_v27 = vmul.f32 %v967_v26, %v641_v12  ;;  %v658_v28 = vmul.f32 %v967_v26, %v642_v13 }
 0x15e   : > { %vm659_vm1 = vcmp.ge.f32.partialorder %v657_v27, 0.0  ;;  %vm660_vm2 = vcmp.ge.f32.partialorder %v658_v28, 0.0  ;;  %v661_v29 = vmul.f32 0.2, %v657_v27  ;;  %v662_v30 = vmul.f32 0.2, %v658_v28 }
 0x160   : > { %v663_v31 = vsel %vm659_vm1, %v657_v27, %v661_v29  ;;  %v664_v32 = vsel %vm660_vm2, %v658_v28, %v662_v30 }
 0x161   : > { %v825_v33 = vpack.c.bf16 %v664_v32, %v663_v31 }
 0x163   : > { %826 = vst [vmem:[%s1119_s29] sm:$0xff] %v825_v33  }
 0x164 PF: > { %s13_s18 = sadd.s32 1, %s1022_s18   ;;  %s1190_s12 = smov %s1002_s13 }
 0x165   : > { %p10_p0 = scmp.ge.s32.totalorder %s13_s18, 6   ;;  %s1191_s13 = smov %s1096_s25 }
 0x166   : > { %s1192_s14 = smov %s1014_s16  ;;  %s1193_s15 = smov %s1018_s17 }
 0x167   : > { %s1194_s16 = smov %s1197_s19  ;;  %s1195_s17 = smov %s1201_s20 }
 0x168   :  { %12 = sbr.rel (!%p10_p0) target bundleno = 4 (0x4), region = 101 }

// kernel: fwd.6
= control target key start
LH: loop header
LB: loop body
LE: loop exit
PB: predicated region body
PF: predicated region fallthrough
CT: control target
= control target key end

     0   :  { %s1074_s12 = smov 0   ;;  %s1076_s13 = smov 0   ;;  %s1216_s0 = inlined_call_operand.vmem [shape: bf16[2,32,512], index: 0, kind: input, shape index: {}]   ;;  %s1217_s1 = inlined_call_operand.vmem [shape: bf16[512,128], index: 1, kind: input, shape index: {}]   ;;  %s1218_s2 = inlined_call_operand.vmem [shape: f32[1,128], index: 2, kind: input, shape index: {}]   ;;  %s1219_s3 = inlined_call_operand.vmem [shape: bf16[2,32,128], index: 3, kind: output, shape index: {}]  }
   0x1   :  { %s1078_s14 = smov 0  }
   0x2 LB: > { %s25_s15 = sadd.s32 1, %s1048_s13  ;;  %p835_p0 = scmp.ge.s32.totalorder %s1052_s14, 1  ;;  %s1052_s14 = sphi %s1078_s14, %s13_s14   ;;  %s1048_s13 = sphi %s1076_s13, %s1221_s13   ;;  %s1044_s12 = sphi %s1074_s12, %s1220_s12  }
   0x3   : > { %p27_p1 = scmp.ge.s32.totalorder %s25_s15, 2  ;;  %p167_p2 = scmp.lt.s32.totalorder %s1052_s14, 3 }
   0x5   : > { %s1223_s15 = smov (%p27_p1, %s25_s15), 0  ;;  %p168_p3 = pnand %p835_p0, %p167_p2 }
   0x6   : > { %p201_p4 = scmp.lt.s32.totalorder (!%p168_p3), %s1044_s12, 1 }
   0x7   : > { %171 = sbr.rel (%p168_p3) target bundleno = 327 (0x147), region = 32 }
   0xc   : > { %v984_v0 = vld [vmem:[%s1217_s1 + $0x78] sm:$0xff]   ;;  %v988_v4 = vld [vmem:[%s1217_s1 + $0x70] sm:$0xff]   ;;  %v992_v8 = vld [vmem:[%s1217_s1 + $0x68] sm:$0xff]   ;;  %s1225_s12 = smov (!%p201_p4, %s1044_s12), 1  ;;  %v662_v49 = vlaneseq }
   0xd   : > { %v985_v1 = vld [vmem:[%s1217_s1 + $0xf8] sm:$0xff]   ;;  %904 = vmatprep.subr.bf16.mxu0 %v984_v0  ;;  %v989_v5 = vld [vmem:[%s1217_s1 + $0xf0] sm:$0xff]   ;;  %v993_v9 = vld [vmem:[%s1217_s1 + $0xe8] sm:$0xff]   ;;  %s887_s24 = sshll.u32 %s1225_s12, 6  ;;  %s888_s17 = sshll.u32 %s1225_s12, 4 }
   0xe   : > { %v986_v2 = vld [vmem:[%s1217_s1 + $0x38] sm:$0xff]   ;;  %932 = vmatprep.subr.bf16.mxu1 %v985_v1  ;;  %v990_v6 = vld [vmem:[%s1217_s1 + $0x30] sm:$0xff]   ;;  %v994_v10 = vld [vmem:[%s1217_s1 + $0x28] sm:$0xff]   ;;  %s208_s6 = scalar_lea.vmem %s1216_s0, %s887_s24  ;;  %v663_v59 = vshrl.u32 %v662_v49, 7  ;;  %s220_s20 = scalar_lea.vmem %s1219_s3, %s888_s17 }
   0xf   : > { %v987_v3 = vld [vmem:[%s1217_s1 + $0xb8] sm:$0xff]   ;;  %905 = vmatpush3.bf16.msra.mxu0 %v986_v2  ;;  %v991_v7 = vld [vmem:[%s1217_s1 + $0xb0] sm:$0xff]   ;;  %v995_v11 = vld [vmem:[%s1217_s1 + $0xa8] sm:$0xff]  }
  0x10   : > { %933 = vmatpush3.bf16.msra.mxu1 %v987_v3  ;;  %906 = vmatprep.subr.bf16.mxu0 %v988_v4  ;;  %v996_v12 = vld [vmem:[%s1217_s1 + $0x60] sm:$0xff]   ;;  %v1000_v16 = vld [vmem:[%s1217_s1 + $0x58] sm:$0xff]   ;;  %v1004_v20 = vld [vmem:[%s1217_s1 + $0x50] sm:$0xff]  }
  0x11   : > { %934 = vmatprep.subr.bf16.mxu1 %v989_v5  ;;  %v997_v13 = vld [vmem:[%s1217_s1 + $0xe0] sm:$0xff]   ;;  %v1001_v17 = vld [vmem:[%s1217_s1 + $0xd8] sm:$0xff]   ;;  %v1005_v21 = vld [vmem:[%s1217_s1 + $0xd0] sm:$0xff]  }
  0x12   : > { %v998_v14 = vld [vmem:[%s1217_s1 + $0x20] sm:$0xff]   ;;  %v1002_v18 = vld [vmem:[%s1217_s1 + $0x18] sm:$0xff]   ;;  %v1006_v22 = vld [vmem:[%s1217_s1 + $0x10] sm:$0xff]  }
  0x13   : > { %907 = vmatpush3.bf16.msra.mxu0 %v990_v6  ;;  %v999_v15 = vld [vmem:[%s1217_s1 + $0xa0] sm:$0xff]   ;;  %v1003_v19 = vld [vmem:[%s1217_s1 + $0x98] sm:$0xff]   ;;  %v1007_v23 = vld [vmem:[%s1217_s1 + $0x90] sm:$0xff]   ;;  %v666_v6 = vadd.s32 24, %v663_v59 }
  0x14   : > { %935 = vmatpush3.bf16.msra.mxu1 %v991_v7  ;;  %908 = vmatprep.subr.bf16.mxu0 %v992_v8  ;;  %v1008_v24 = vld [vmem:[%s1217_s1 + $0x48] sm:$0xff]   ;;  %v1012_v28 = vld [vmem:[%s1217_s1 + $0x40] sm:$0xff]  }
  0x15   : > { %936 = vmatprep.subr.bf16.mxu1 %v993_v9  ;;  %v1009_v25 = vld [vmem:[%s1217_s1 + $0xc8] sm:$0xff]   ;;  %v1013_v29 = vld [vmem:[%s1217_s1 + $0xc0] sm:$0xff]   ;;  %vm670_vm0 = vcmp.lt.s32.totalorder %v666_v6, 25 }
  0x16   : > { %v1010_v26 = vld [vmem:[%s1217_s1 + $0x8] sm:$0xff]   ;;  %v1014_v30 = vld [vmem:[%s1217_s1] sm:$0xff]  }
  0x17   : > { %909 = vmatpush3.bf16.msra.mxu0 %v994_v10  ;;  %v1011_v27 = vld [vmem:[%s1217_s1 + $0x88] sm:$0xff]   ;;  %v1015_v31 = vld [vmem:[%s1217_s1 + $0x80] sm:$0xff]  }
  0x18   : > { %937 = vmatpush3.bf16.msra.mxu1 %v995_v11  ;;  %910 = vmatprep.subr.bf16.mxu0 %v996_v12  ;;  %v1016_v32 = vld [vmem:[%s208_s6] ss:$16 sps:$4 sm:$0xff]   ;;  %v1018_v33 = vld [vmem:[%s208_s6 + $0x4] ss:$16 sps:$4 sm:$0xff]   ;;  %v1019_v34 = vld [vmem:[%s208_s6 + $0x8] ss:$16 sps:$4 sm:$0xff]  }
  0x19   : > { %938 = vmatprep.subr.bf16.mxu1 %v997_v13  ;;  %v1021_v35 = vld [vmem:[%s208_s6 + $0xc] ss:$16 sps:$4 sm:$0xff]   ;;  %570 = vmatprep.mubr.bf16.mxu0 %v1018_v33  ;;  %v1022_v36 = vld [vmem:[%s208_s6 + $0x24] ss:$16 sps:$4 sm:$0xff]   ;;  %v1026_v38 = vld [vmem:[%s208_s6 + $0x20] ss:$16 sps:$4 sm:$0xff]  }
  0x1a   : > { %619 = vmatprep.mubr.bf16.mxu1 %v1021_v35  ;;  %v1024_v37 = vld [vmem:[%s208_s6 + $0x2c] ss:$16 sps:$4 sm:$0xff]   ;;  %v1027_v39 = vld [vmem:[%s208_s6 + $0x28] ss:$16 sps:$4 sm:$0xff]   ;;  %v880_v0 = vld [vmem:[%s1218_s2] ss:$0 sm:$0xff] }
  0x1b   : > { %911 = vmatpush3.bf16.msra.mxu0 %v998_v14 }
  0x1c   : > { %939 = vmatpush3.bf16.msra.mxu1 %v999_v15  ;;  %912 = vmatprep.subr.bf16.mxu0 %v1000_v16 }
  0x1d   : > { %940 = vmatprep.subr.bf16.mxu1 %v1001_v17 }
  0x1f   : > { %913 = vmatpush3.bf16.msra.mxu0 %v1002_v18 }
  0x20   : > { %941 = vmatpush3.bf16.msra.mxu1 %v1003_v19  ;;  %914 = vmatprep.subr.bf16.mxu0 %v1004_v20 }
  0x21   : > { %942 = vmatprep.subr.bf16.mxu1 %v1005_v21 }
  0x23   : > { %915 = vmatpush3.bf16.msra.mxu0 %v1006_v22 }
  0x24   : > { %943 = vmatpush3.bf16.msra.mxu1 %v1007_v23  ;;  %916 = vmatprep.subr.bf16.mxu0 %v1008_v24 }
  0x25   : > { %944 = vmatprep.subr.bf16.mxu1 %v1009_v25 }
  0x27   : > { %917 = vmatpush3.bf16.msra.mxu0 %v1010_v26 }
  0x28   : > { %945 = vmatpush3.bf16.msra.mxu1 %v1011_v27  ;;  %918 = vmatprep.subr.bf16.mxu0 %v1012_v28 }
  0x29   : > { %946 = vmatprep.subr.bf16.mxu1 %v1013_v29 }
  0x2b   : > { %919 = vmatpush3.bf16.msra.mxu0 %v1014_v30 }
  0x2c   : > { %947 = vmatpush3.bf16.msra.mxu1 %v1015_v31 }
  0x2e   : > { %571 = vmatmul.mubr.bf16.vlgmr.msra.gmra.mxu0 %v1016_v32 }
  0x2f   : > { %620 = vmatmul.mubr.bf16.vlgmr.msra.gmra.mxu1 %v1019_v34  ;;  %578 = vmatprep.mubr.bf16.mxu0 %v1022_v36 }
  0x30   : > { %627 = vmatprep.mubr.bf16.mxu1 %v1024_v37 }
  0x36   : > { %579 = vmatmul.mubr.bf16.gmra.mxu0 %v1026_v38 }
  0x37   : > { %628 = vmatmul.mubr.bf16.gmra.mxu1 %v1027_v39 }
  0xee   : > { %v920_v40 = vpop.f32.mrf.mxu0 }
  0xef   : > { %v948_v41 = vpop.f32.mrf.mxu1 }
  0xf0   : > { %v921_v42 = vpop.f32.mrf.mxu0 }
  0xf1   : > { %v949_v43 = vpop.f32.mrf.mxu1  ;;  %v922_v52 = vadd.f32 %v921_v42, %v920_v40 }
  0xf2   : > { %v923_v44 = vpop.f32.mrf.mxu0  ;;  %v950_v53 = vadd.f32 %v949_v43, %v948_v41 }
  0xf3   : > { %v951_v45 = vpop.f32.mrf.mxu1 }
  0xf4   : > { %v924_v46 = vpop.f32.mrf.mxu0  ;;  %v622_v62 = vadd.f32 %v950_v53, %v922_v52 }
  0xf5   : > { %v925_v47 = vadd.f32 %v924_v46, %v923_v44  ;;  %v952_v48 = vpop.f32.mrf.mxu1 }
  0xf6   : > { %v953_v50 = vadd.f32 %v952_v48, %v951_v45  ;;  %v926_v51 = vpop.f32.mrf.mxu0  ;;  %v658_v8 = vadd.f32 %v880_v0, %v622_v62 }
  0xf7   : > { %v954_v54 = vpop.f32.mrf.mxu1 }
  0xf8   : > { %v927_v55 = vpop.f32.mrf.mxu0  ;;  %v625_v56 = vadd.f32 %v953_v50, %v925_v47 }
  0xf9   : > { %v928_v57 = vadd.f32 %v927_v55, %v926_v51  ;;  %v955_v58 = vpop.f32.mrf.mxu1 }
  0xfa   : > { %v956_v60 = vadd.f32 %v955_v58, %v954_v54  ;;  %v929_v61 = vpop.f32.mrf.mxu0  ;;  %v659_v3 = vadd.f32 %v880_v0, %v625_v56 }
  0xfb   : > { %v957_v63 = vpop.f32.mrf.mxu1 }
  0xfc   : > { %v630_v1 = vadd.f32 %v956_v60, %v928_v57  ;;  %v930_v2 = vpop.f32.mrf.mxu0  ;;  %v675_v11 = vadd.f32 %v659_v3, %v658_v8 }
  0xfd   : > { %v931_v4 = vadd.f32 %v930_v2, %v929_v61  ;;  %v958_v5 = vpop.f32.mrf.mxu1 }
  0xfe   : > { %v959_v7 = vadd.f32 %v958_v5, %v957_v63  ;;  %v660_v9 = vadd.f32 %v880_v0, %v630_v1 }
 0x100   : > { %v633_v10 = vadd.f32 %v959_v7, %v931_v4  ;;  %v676_v13 = vadd.f32 %v675_v11, %v660_v9 }
 0x102   : > { %v661_v12 = vadd.f32 %v880_v0, %v633_v10 }
 0x104   : > { %v674_v14 = vsel %vm670_vm0, %v661_v12, 0.0 }
 0x105   : > { %v677_v15 = vadd.f32 %v676_v13, %v674_v14 }
 0x107   : > { %v678_v16 = vrot.slane %v677_v15, 4 }
 0x109   : > { %v679_v17 = vadd.f32 %v678_v16, %v677_v15 }
 0x10b   : > { %v680_v18 = vrot.slane %v679_v17, 2 }
 0x10d   : > { %v681_v19 = vadd.f32 %v680_v18, %v679_v17 }
 0x10f   : > { %v682_v20 = vrot.slane %v681_v19, 1 }
 0x111   : > { %v683_v21 = vadd.f32 %v682_v20, %v681_v19 }
 0x113   : > { %v684_v22 = vmul.f32 0.04, %v683_v21 }
 0x115   : > { %v685_v23 = vsub.f32 %v658_v8, %v684_v22  ;;  %v686_v24 = vsub.f32 %v659_v3, %v684_v22  ;;  %v687_v25 = vsub.f32 %v660_v9, %v684_v22  ;;  %v688_v26 = vsub.f32 %v661_v12, %v684_v22 }
 0x117   : > { %v693_v27 = vmul.f32 %v685_v23, %v685_v23  ;;  %v694_v28 = vmul.f32 %v686_v24, %v686_v24  ;;  %v692_v29 = vsel %vm670_vm0, %v688_v26, 0.0  ;;  %v695_v30 = vmul.f32 %v687_v25, %v687_v25 }
 0x118   : > { %v696_v32 = vmul.f32 %v692_v29, %v692_v29 }
 0x119   : > { %v697_v31 = vadd.f32 %v694_v28, %v693_v27 }
 0x11b   : > { %v698_v33 = vadd.f32 %v697_v31, %v695_v30 }
 0x11d   : > { %v699_v34 = vadd.f32 %v698_v33, %v696_v32 }
 0x11f   : > { %v700_v35 = vrot.slane %v699_v34, 4 }
 0x121   : > { %v701_v36 = vadd.f32 %v700_v35, %v699_v34 }
 0x123   : > { %v702_v37 = vrot.slane %v701_v36, 2 }
 0x125   : > { %v703_v38 = vadd.f32 %v702_v37, %v701_v36 }
 0x127   : > { %v704_v39 = vrot.slane %v703_v38, 1 }
 0x129   : > { %v705_v40 = vadd.f32 %v704_v39, %v703_v38 }
 0x12b   : > { %v706_v41 = vmul.f32 0.04, %v705_v40 }
 0x12d   : > { %v707_v42 = vadd.f32 1e-05, %v706_v41 }
 0x12f   : > { %1028 = vrsqrt.f32 %v707_v42 }
 0x13c   : > { %v1029_v43 = vpop.eup %1028 }
 0x13d   : > { %v709_v44 = vmul.f32 %v1029_v43, %v685_v23  ;;  %v710_v45 = vmul.f32 %v1029_v43, %v686_v24  ;;  %v711_v46 = vmul.f32 %v1029_v43, %v687_v25  ;;  %v712_v47 = vmul.f32 %v1029_v43, %v688_v26 }
 0x13f   : > { %vm713_vm1 = vcmp.ge.f32.partialorder %v709_v44, 0.0  ;;  %vm714_vm2 = vcmp.ge.f32.partialorder %v710_v45, 0.0  ;;  %vm715_vm3 = vcmp.ge.f32.partialorder %v711_v46, 0.0  ;;  %vm716_vm4 = vcmp.ge.f32.partialorder %v712_v47, 0.0 }
 0x140   : > { %v717_v48 = vmul.f32 0.2, %v709_v44  ;;  %v718_v49 = vmul.f32 0.2, %v710_v45  ;;  %v719_v50 = vmul.f32 0.2, %v711_v46 }
 0x141   : > { %v720_v51 = vmul.f32 0.2, %v712_v47 }
 0x142   : > { %v721_v52 = vsel %vm713_vm1, %v709_v44, %v717_v48  ;;  %v722_v53 = vsel %vm714_vm2, %v710_v45, %v718_v49  ;;  %v723_v54 = vsel %vm715_vm3, %v711_v46, %v719_v50 }
 0x143   : > { %v724_v55 = vsel %vm716_vm4, %v712_v47, %v720_v51  ;;  %v896_v56 = vpack.c.bf16 %v722_v53, %v721_v52 }
 0x144   : > { %v901_v57 = vpack.c.bf16 %v724_v55, %v723_v54 }
 0x145   : > { %897 = vst [vmem:[%s220_s20] sm:$0xff] %v896_v56  }
 0x146   : > { %903 = vst [vmem:[%s220_s20 + $0x8] sm:$0xff] %v901_v57  }
 0x147 PF: > { %s13_s14 = sadd.s32 1, %s1052_s14   ;;  %s1220_s12 = smov %s1048_s13 }
 0x148   : > { %p10_p5 = scmp.ge.s32.totalorder %s13_s14, 4   ;;  %s1221_s13 = smov %s1223_s15 }
 0x14a   :  { %12 = sbr.rel (!%p10_p5) target bundleno = 2 (0x2), region = 73 }

// kernel: fwd.8
= control target key start
LH: loop header
LB: loop body
LE: loop exit
PB: predicated region body
PF: predicated region fallthrough
CT: control target
= control target key end

     0   :  { %s1284_s12 = smov 0   ;;  %s1286_s13 = smov 0   ;;  %s1458_s0 = inlined_call_operand.vmem [shape: bf16[2,16,2048], index: 0, kind: input, shape index: {}]   ;;  %s1459_s1 = inlined_call_operand.vmem [shape: bf16[2048,256], index: 1, kind: input, shape index: {}]   ;;  %s1460_s2 = inlined_call_operand.vmem [shape: f32[1,256], index: 2, kind: input, shape index: {}]   ;;  %s1461_s3 = inlined_call_operand.vmem [shape: bf16[2,16,256], index: 3, kind: output, shape index: {}]  }
   0x1   :  { %s1288_s14 = smov 0   ;;  %s1290_s15 = smov 0  }
   0x2   :  { %s1292_s16 = smov 0   ;;  %s1294_s17 = smov 0  }
   0x3   :  { %s1296_s18 = smov 0  }
   0x4 LB: > { %s22_s19 = sadd.s32 1, %s1253_s16  ;;  %s25_s20 = sadd.s32 1, %s1257_s17  ;;  %s1261_s18 = sphi %s1296_s18, %s13_s18   ;;  %s1257_s17 = sphi %s1294_s17, %s1467_s17   ;;  %s1253_s16 = sphi %s1292_s16, %s1466_s16   ;;  %s1249_s15 = sphi %s1290_s15, %s1465_s15   ;;  %s1245_s14 = sphi %s1288_s14, %s1464_s14   ;;  %s1241_s13 = sphi %s1286_s13, %s1463_s13   ;;  %s1237_s12 = sphi %s1284_s12, %s1462_s12  }
   0x5   : > { %p23_p0 = scmp.ge.s32.totalorder %s22_s19, 4  ;;  %p41_p1 = scmp.ne.s32.totalorder %s1241_s13, %s1237_s12 }
   0x6   : > { %p42_p2 = scmp.eq.s32.totalorder %s1261_s18, 0  ;;  %s34_s24 = sadd.s32 1, %s1241_s13 }
   0x7   : > { %s1469_s19 = smov (%p23_p0, %s22_s19), 0  ;;  %s1471_s20 = smov (!%p23_p0, %s25_s20), %s1257_s17 }
   0x8   : > { %p43_p3 = por %p42_p2, %p41_p1  ;;  %p27_p4 = scmp.ge.s32.totalorder %s1471_s20, 2 }
   0x9   : > { %s30_s21 = ssub.s32 %s1253_s16, %s1469_s19  ;;  %p954_p6 = scmp.ge.s32.totalorder %s1261_s18, 8 }
   0xa   : > { %s1473_s20 = smov (%p27_p4, %s1471_s20), 0 }
   0xb   : > { %s29_s22 = ssub.s32 %s1257_s17, %s1473_s20  ;;  %143 = sbr.rel (%p954_p6) target bundleno = 25 (0x19), region = 20 }
   0xc   : > { %s31_s23 = sor.u32 %s30_s21, %s29_s22 }
   0xd   : > { %p32_p5 = scmp.eq.s32.totalorder %s31_s23, 0 }
   0xf   : > { %s1335_s25 = scalar_select %p32_p5, %s1241_s13, %s34_s24  }
  0x10   : > { %146 = sbr.rel (!%p43_p3) target bundleno = 25 (0x19), region = 24  ;;  %s148_s26 = sand.u32 (%p43_p3), 1, %s1241_s13  }
  0x11   : > { %s956_s27 = sshll.u32 (%p43_p3), %s1253_s16, 2  ;;  %s955_s28 = sshll.u32 (%p43_p3), %s148_s26, 5 }
  0x12   : > { %s957_s29 = sshll.u32 (%p43_p3), %s1257_s17, 5  ;;  %s150_s8 = scalar_lea.vmem (%p43_p3), [#allocation3], %s955_s28 }
  0x13   : > { %s153_s30 = sadd.s32 (%p43_p3), %s957_s29, %s956_s27 }
  0x14   : > { %s958_s4 = sshll.u32 (%p43_p3), %s153_s30, 2 }
  0x15   : > { %s155_s7 = scalar_lea.vmem %s1458_s0, %s958_s4 }
  0x16   : > { %v168_v0 = vld [vmem:[%s155_s7] sm:$0xff]  ;;  %v170_v1 = vld [vmem:[%s155_s7 + $0x8] sm:$0xff] }
  0x17   : > { %v172_v2 = vld [vmem:[%s155_s7 + $0x40] sm:$0xff]  ;;  %169 = vst [vmem:[%s150_s8] sm:$0xff] %v168_v0  ;;  %171 = vst [vmem:[%s150_s8 + $0x8] sm:$0xff] %v170_v1  ;;  %v174_v3 = vld [vmem:[%s155_s7 + $0x48] sm:$0xff] }
  0x18   : > { %173 = vst [vmem:[%s150_s8 + $0x10] sm:$0xff] %v172_v2  ;;  %175 = vst [vmem:[%s150_s8 + $0x18] sm:$0xff] %v174_v3 }
  0x19 PF: > { %p959_p7 = scmp.ge.s32.totalorder %s1261_s18, 1  ;;  %p190_p8 = scmp.lt.s32.totalorder %s1261_s18, 9 }
  0x1b   : > { %p191_p9 = pnand %p959_p7, %p190_p8 }
  0x1c   : > { %s197_s9 = sand.u32 (!%p191_p9), 1, %s1237_s12   ;;  %s961_s10 = sshll.u32 (!%p191_p9), %s1245_s14, 6 }
  0x1d   : > { %194 = sbr.rel (%p191_p9) target bundleno = 386 (0x182), region = 51  ;;  %s960_s11 = sshll.u32 (!%p191_p9), %s197_s9, 5 }
  0x1e   : > { %p228_p10 = scmp.lt.s32.totalorder (!%p191_p9), %s961_s10, 255  ;;  %p234_p11 = scmp.lt.s32.totalorder (!%p191_p9), %s1249_s15, 1 }
  0x1f   : > { %s1360_s30 = scalar_lea.vmem (!%p191_p9), [#allocation3], %s960_s11  ;;  %p966_p12 = scmp.ne.s32.totalorder (!%p191_p9), %s1245_s14, 0 }
  0x22   : > { %s1475_s10 = smov (!%p228_p10, %s961_s10), 255  ;;  %s1477_s15 = smov (!%p234_p11, %s1249_s15), 1 }
  0x23   : > { %s1040_s21 = sshll.u32 %s1475_s10, 3  ;;  %s1041_s26 = sshll.u32 %s1477_s15, 4 }
  0x24   : > { %s1353_s24 = scalar_lea.vmem %s1459_s1, %s1040_s21  ;;  %s1358_s29 = scalar_lea.vmem %s1461_s3, %s1041_s26 }
  0x25   : > { %242 = sbr.rel (%p966_p12) target bundleno = 45 (0x2d), region = 59 }
  0x2a   : > { %v1263_v4 = vmov 0.0  }
  0x2b   : > { %243 = vst [vmem:[#allocation2 + $0x10] sm:$0xff] %v1263_v4  ;;  %244 = vst [vmem:[#allocation2] sm:$0xff] %v1263_v4 }
  0x2c   : > { %245 = vst [vmem:[#allocation2 + $0x18] sm:$0xff] %v1263_v4  ;;  %246 = vst [vmem:[#allocation2 + $0x8] sm:$0xff] %v1263_v4 }
  0x2d PF: > { %v1101_v5 = vld [vmem:[%s1353_s24 + $0x74] ss:$8 sps:$4 sm:$0xff]   ;;  %v1105_v7 = vld [vmem:[%s1353_s24 + $0x70] ss:$8 sps:$4 sm:$0xff]   ;;  %v1107_v9 = vld [vmem:[%s1353_s24 + $0x64] ss:$8 sps:$4 sm:$0xff]  }
  0x2e   : > { %v1103_v6 = vld [vmem:[%s1353_s24 + $0x174] ss:$8 sps:$4 sm:$0xff]   ;;  %659 = vmatprep.subr.bf16.mxu0 %v1101_v5  ;;  %v1106_v8 = vld [vmem:[%s1353_s24 + $0x170] ss:$8 sps:$4 sm:$0xff]   ;;  %v1109_v10 = vld [vmem:[%s1353_s24 + $0x164] ss:$8 sps:$4 sm:$0xff]  }
  0x2f   : > { %702 = vmatprep.subr.bf16.mxu1 %v1103_v6  ;;  %660 = vmatpush1.bf16.msra.mxu0 %v1105_v7  ;;  %v1111_v11 = vld [vmem:[%s1353_s24 + $0x60] ss:$8 sps:$4 sm:$0xff]   ;;  %v1113_v13 = vld [vmem:[%s1353_s24 + $0x54] ss:$8 sps:$4 sm:$0xff]   ;;  %v1117_v15 = vld [vmem:[%s1353_s24 + $0x50] ss:$8 sps:$4 sm:$0xff]  }
  0x30   : > { %703 = vmatpush1.bf16.msra.mxu1 %v1106_v8  ;;  %661 = vmatprep.subr.bf16.mxu0 %v1107_v9  ;;  %v1112_v12 = vld [vmem:[%s1353_s24 + $0x160] ss:$8 sps:$4 sm:$0xff]   ;;  %v1115_v14 = vld [vmem:[%s1353_s24 + $0x154] ss:$8 sps:$4 sm:$0xff]   ;;  %v1118_v16 = vld [vmem:[%s1353_s24 + $0x150] ss:$8 sps:$4 sm:$0xff]  }
  0x31   : > { %704 = vmatprep.subr.bf16.mxu1 %v1109_v10  ;;  %v1119_v17 = vld [vmem:[%s1353_s24 + $0x44] ss:$8 sps:$4 sm:$0xff]   ;;  %v1123_v19 = vld [vmem:[%s1353_s24 + $0x40] ss:$8 sps:$4 sm:$0xff]   ;;  %v1125_v21 = vld [vmem:[%s1353_s24 + $0x34] ss:$8 sps:$4 sm:$0xff]  }
  0x32   : > { %v1121_v18 = vld [vmem:[%s1353_s24 + $0x144] ss:$8 sps:$4 sm:$0xff]   ;;  %v1124_v20 = vld [vmem:[%s1353_s24 + $0x140] ss:$8 sps:$4 sm:$0xff]   ;;  %v1127_v22 = vld [vmem:[%s1353_s24 + $0x134] ss:$8 sps:$4 sm:$0xff]  }
  0x33   : > { %662 = vmatpush1.bf16.msra.mxu0 %v1111_v11  ;;  %v1129_v23 = vld [vmem:[%s1353_s24 + $0x30] ss:$8 sps:$4 sm:$0xff]   ;;  %v1131_v25 = vld [vmem:[%s1353_s24 + $0x24] ss:$8 sps:$4 sm:$0xff]   ;;  %v1135_v27 = vld [vmem:[%s1353_s24 + $0x20] ss:$8 sps:$4 sm:$0xff]  }
  0x34   : > { %705 = vmatpush1.bf16.msra.mxu1 %v1112_v12  ;;  %663 = vmatprep.subr.bf16.mxu0 %v1113_v13  ;;  %v1130_v24 = vld [vmem:[%s1353_s24 + $0x130] ss:$8 sps:$4 sm:$0xff]   ;;  %v1133_v26 = vld [vmem:[%s1353_s24 + $0x124] ss:$8 sps:$4 sm:$0xff]   ;;  %v1136_v28 = vld [vmem:[%s1353_s24 + $0x120] ss:$8 sps:$4 sm:$0xff]  }
  0x35   : > { %706 = vmatprep.subr.bf16.mxu1 %v1115_v14  ;;  %v1137_v29 = vld [vmem:[%s1353_s24 + $0x14] ss:$8 sps:$4 sm:$0xff]   ;;  %v1141_v31 = vld [vmem:[%s1353_s24 + $0x10] ss:$8 sps:$4 sm:$0xff]   ;;  %v1143_v33 = vld [vmem:[%s1353_s24 + $0x4] ss:$8 sps:$4 sm:$0xff]  }
  0x36   : > { %v1139_v30 = vld [vmem:[%s1353_s24 + $0x114] ss:$8 sps:$4 sm:$0xff]   ;;  %v1142_v32 = vld [vmem:[%s1353_s24 + $0x110] ss:$8 sps:$4 sm:$0xff]   ;;  %v1145_v34 = vld [vmem:[%s1353_s24 + $0x104] ss:$8 sps:$4 sm:$0xff]  }
  0x37   : > { %664 = vmatpush1.bf16.msra.mxu0 %v1117_v15  ;;  %v1147_v35 = vld [vmem:[%s1353_s24] ss:$8 sps:$4 sm:$0xff]   ;;  %v1149_v37 = vld [vmem:[%s1353_s24 + $0xf4] ss:$8 sps:$4 sm:$0xff]   ;;  %v1153_v39 = vld [vmem:[%s1353_s24 + $0xf0] ss:$8 sps:$4 sm:$0xff]  }
  0x38   : > { %707 = vmatpush1.bf16.msra.mxu1 %v1118_v16  ;;  %665 = vmatprep.subr.bf16.mxu0 %v1119_v17  ;;  %v1148_v36 = vld [vmem:[%s1353_s24 + $0x100] ss:$8 sps:$4 sm:$0xff]   ;;  %v1151_v38 = vld [vmem:[%s1353_s24 + $0x1f4] ss:$8 sps:$4 sm:$0xff]   ;;  %v1154_v40 = vld [vmem:[%s1353_s24 + $0x1f0] ss:$8 sps:$4 sm:$0xff]  }
  0x39   : > { %708 = vmatprep.subr.bf16.mxu1 %v1121_v18  ;;  %v1155_v41 = vld [vmem:[%s1353_s24 + $0xe4] ss:$8 sps:$4 sm:$0xff]   ;;  %v1159_v43 = vld [vmem:[%s1353_s24 + $0xe0] ss:$8 sps:$4 sm:$0xff]   ;;  %v1161_v45 = vld [vmem:[%s1353_s24 + $0xd4] ss:$8 sps:$4 sm:$0xff]  }
  0x3a   : > { %v1157_v42 = vld [vmem:[%s1353_s24 + $0x1e4] ss:$8 sps:$4 sm:$0xff]   ;;  %v1160_v44 = vld [vmem:[%s1353_s24 + $0x1e0] ss:$8 sps:$4 sm:$0xff]   ;;  %v1163_v46 = vld [vmem:[%s1353_s24 + $0x1d4] ss:$8 sps:$4 sm:$0xff]  }
  0x3b   : > { %666 = vmatpush1.bf16.msra.mxu0 %v1123_v19  ;;  %v1165_v47 = vld [vmem:[%s1353_s24 + $0xd0] ss:$8 sps:$4 sm:$0xff]   ;;  %v1167_v49 = vld [vmem:[%s1353_s24 + $0xc4] ss:$8 sps:$4 sm:$0xff]   ;;  %v1171_v51 = vld [vmem:[%s1353_s24 + $0xc0] ss:$8 sps:$4 sm:$0xff]  }
  0x3c   : > { %709 = vmatpush1.bf16.msra.mxu1 %v1124_v20  ;;  %667 = vmatprep.subr.bf16.mxu0 %v1125_v21  ;;  %v1166_v48 = vld [vmem:[%s1353_s24 + $0x1d0] ss:$8 sps:$4 sm:$0xff]   ;;  %v1169_v50 = vld [vmem:[%s1353_s24 + $0x1c4] ss:$8 sps:$4 sm:$0xff]   ;;  %v1172_v53 = vld [vmem:[%s1353_s24 + $0x1c0] ss:$8 sps:$4 sm:$0xff]  }
  0x3d   : > { %710 = vmatprep.subr.bf16.mxu1 %v1127_v22  ;;  %v1199_v52 = vld [vmem:[%s1360_s30 + $0x4] ss:$16 sps:$4 sm:$0xff]   ;;  %v1202_v56 = vld [vmem:[%s1360_s30 + $0xc] ss:$16 sps:$4 sm:$0xff]   ;;  %v1177_v57 = vld [vmem:[%s1353_s24 + $0xb0] ss:$8 sps:$4 sm:$0xff]  }
  0x3e   : > { %v1173_v54 = vld [vmem:[%s1353_s24 + $0xb4] ss:$8 sps:$4 sm:$0xff]   ;;  %691 = vmatprep.mubr.bf16.mxu0 %v1199_v52  ;;  %734 = vmatprep.mubr.bf16.mxu1 %v1202_v56  ;;  %v1178_v58 = vld [vmem:[%s1353_s24 + $0x1b0] ss:$8 sps:$4 sm:$0xff]   ;;  %v1179_v59 = vld [vmem:[%s1353_s24 + $0xa4] ss:$8 sps:$4 sm:$0xff]  }
  0x3f   : > { %668 = vmatpush1.bf16.msra.mxu0 %v1129_v23  ;;  %v1175_v55 = vld [vmem:[%s1353_s24 + $0x1b4] ss:$8 sps:$4 sm:$0xff]   ;;  %v1181_v60 = vld [vmem:[%s1353_s24 + $0x1a4] ss:$8 sps:$4 sm:$0xff]   ;;  %v1183_v61 = vld [vmem:[%s1353_s24 + $0xa0] ss:$8 sps:$4 sm:$0xff]  }
  0x40   : > { %711 = vmatpush1.bf16.msra.mxu1 %v1130_v24  ;;  %669 = vmatprep.subr.bf16.mxu0 %v1131_v25  ;;  %v1184_v62 = vld [vmem:[%s1353_s24 + $0x1a0] ss:$8 sps:$4 sm:$0xff]   ;;  %v1185_v63 = vld [vmem:[%s1353_s24 + $0x94] ss:$8 sps:$4 sm:$0xff]   ;;  %v1189_v1 = vld [vmem:[%s1353_s24 + $0x90] ss:$8 sps:$4 sm:$0xff]  }
  0x41   : > { %712 = vmatprep.subr.bf16.mxu1 %v1133_v26  ;;  %v1187_v0 = vld [vmem:[%s1353_s24 + $0x194] ss:$8 sps:$4 sm:$0xff]   ;;  %v1190_v2 = vld [vmem:[%s1353_s24 + $0x190] ss:$8 sps:$4 sm:$0xff]   ;;  %v1191_v3 = vld [vmem:[%s1353_s24 + $0x84] ss:$8 sps:$4 sm:$0xff]  }
  0x42   : > { %v1193_v4 = vld [vmem:[%s1353_s24 + $0x184] ss:$8 sps:$4 sm:$0xff]   ;;  %v1195_v5 = vld [vmem:[%s1353_s24 + $0x80] ss:$8 sps:$4 sm:$0xff]   ;;  %v247_v10 = vld [vmem:[#allocation2 + $0x10] sm:$0xff]  ;;  %p1035_p13 = scmp.ne.s32.totalorder %s1245_s14, 3 }
  0x43   : > { %670 = vmatpush1.bf16.msra.mxu0 %v1135_v27  ;;  %v1196_v6 = vld [vmem:[%s1353_s24 + $0x180] ss:$8 sps:$4 sm:$0xff]   ;;  %v249_v19 = vld [vmem:[#allocation2 + $0x18] sm:$0xff] }
  0x44   : > { %713 = vmatpush1.bf16.msra.mxu1 %v1136_v28  ;;  %671 = vmatprep.subr.bf16.mxu0 %v1137_v29  ;;  %v1197_v7 = vld [vmem:[%s1360_s30] ss:$16 sps:$4 sm:$0xff]   ;;  %v1200_v8 = vld [vmem:[%s1360_s30 + $0x8] ss:$16 sps:$4 sm:$0xff]  }
  0x45   : > { %714 = vmatprep.subr.bf16.mxu1 %v1139_v30  ;;  %v248_v14 = vld [vmem:[#allocation2] sm:$0xff]  ;;  %v250_v24 = vld [vmem:[#allocation2 + $0x8] sm:$0xff] }
  0x47   : > { %672 = vmatpush1.bf16.msra.mxu0 %v1141_v31 }
  0x48   : > { %715 = vmatpush1.bf16.msra.mxu1 %v1142_v32  ;;  %673 = vmatprep.subr.bf16.mxu0 %v1143_v33 }
  0x49   : > { %716 = vmatprep.subr.bf16.mxu1 %v1145_v34 }
  0x4b   : > { %674 = vmatpush1.bf16.msra.mxu0 %v1147_v35 }
  0x4c   : > { %717 = vmatpush1.bf16.msra.mxu1 %v1148_v36  ;;  %675 = vmatprep.subr.bf16.mxu0 %v1149_v37 }
  0x4d   : > { %718 = vmatprep.subr.bf16.mxu1 %v1151_v38 }
  0x4f   : > { %676 = vmatpush2.bf16.msra.mxu0 %v1153_v39 }
  0x50   : > { %719 = vmatpush2.bf16.msra.mxu1 %v1154_v40  ;;  %677 = vmatprep.subr.bf16.mxu0 %v1155_v41 }
  0x51   : > { %720 = vmatprep.subr.bf16.mxu1 %v1157_v42 }
  0x53   : > { %678 = vmatpush2.bf16.msra.mxu0 %v1159_v43 }
  0x54   : > { %721 = vmatpush2.bf16.msra.mxu1 %v1160_v44  ;;  %679 = vmatprep.subr.bf16.mxu0 %v1161_v45 }
  0x55   : > { %722 = vmatprep.subr.bf16.mxu1 %v1163_v46 }
  0x57   : > { %680 = vmatpush2.bf16.msra.mxu0 %v1165_v47 }
  0x58   : > { %723 = vmatpush2.bf16.msra.mxu1 %v1166_v48  ;;  %681 = vmatprep.subr.bf16.mxu0 %v1167_v49 }
  0x59   : > { %724 = vmatprep.subr.bf16.mxu1 %v1169_v50 }
  0x5b   : > { %682 = vmatpush2.bf16.msra.mxu0 %v1171_v51 }
  0x5c   : > { %725 = vmatpush2.bf16.msra.mxu1 %v1172_v53  ;;  %683 = vmatprep.subr.bf16.mxu0 %v1173_v54 }
  0x5d   : > { %726 = vmatprep.subr.bf16.mxu1 %v1175_v55 }
  0x5f   : > { %684 = vmatpush2.bf16.msra.mxu0 %v1177_v57 }
  0x60   : > { %727 = vmatpush2.bf16.msra.mxu1 %v1178_v58  ;;  %685 = vmatprep.subr.bf16.mxu0 %v1179_v59 }
  0x61   : > { %728 = vmatprep.subr.bf16.mxu1 %v1181_v60 }
  0x63   : > { %686 = vmatpush2.bf16.msra.mxu0 %v1183_v61 }
  0x64   : > { %729 = vmatpush2.bf16.msra.mxu1 %v1184_v62  ;;  %687 = vmatprep.subr.bf16.mxu0 %v1185_v63 }
  0x65   : > { %730 = vmatprep.subr.bf16.mxu1 %v1187_v0 }
  0x67   : > { %688 = vmatpush2.bf16.msra.mxu0 %v1189_v1 }
  0x68   : > { %731 = vmatpush2.bf16.msra.mxu1 %v1190_v2  ;;  %689 = vmatprep.subr.bf16.mxu0 %v1191_v3 }
  0x69   : > { %732 = vmatprep.subr.bf16.mxu1 %v1193_v4 }
  0x6b   : > { %690 = vmatpush2.bf16.msra.mxu0 %v1195_v5 }
  0x6c   : > { %733 = vmatpush2.bf16.msra.mxu1 %v1196_v6 }
  0x6e   : > { %692 = vmatmul.mubr.bf16.vlgmr.msra.gmra.mxu0 %v1197_v7 }
  0x6f   : > { %735 = vmatmul.mubr.bf16.vlgmr.msra.gmra.mxu1 %v1200_v8 }
 0x12e   : > { %v693_v9 = vpop.f32.mrf.mxu0 }
 0x12f   : > { %v736_v11 = vpop.f32.mrf.mxu1 }
 0x130   : > { %v737_v12 = vadd.f32 %v736_v11, %v693_v9  ;;  %v695_v13 = vpop.f32.mrf.mxu0 }
 0x131   : > { %v738_v15 = vpop.f32.mrf.mxu1 }
 0x132   : > { %v745_v16 = vadd.f32 %v737_v12, %v247_v10  ;;  %v739_v17 = vadd.f32 %v738_v15, %v695_v13  ;;  %v697_v18 = vpop.f32.mrf.mxu0 }
 0x133   : > { %v740_v20 = vpop.f32.mrf.mxu1 }
 0x134   : > { %749 = vst [vmem:[#allocation2 + $0x10] sm:$0xff] %v745_v16  ;;  %v746_v21 = vadd.f32 %v739_v17, %v248_v14  ;;  %v741_v22 = vadd.f32 %v740_v20, %v697_v18  ;;  %v699_v23 = vpop.f32.mrf.mxu0 }
 0x135   : > { %v742_v25 = vpop.f32.mrf.mxu1 }
 0x136   : > { %750 = vst [vmem:[#allocation2] sm:$0xff] %v746_v21  ;;  %v747_v26 = vadd.f32 %v741_v22, %v249_v19  ;;  %v743_v27 = vadd.f32 %v742_v25, %v699_v23  ;;  %756 = sbr.rel (%p1035_p13) target bundleno = 386 (0x182), region = 63 }
 0x138   : > { %751 = vst [vmem:[#allocation2 + $0x18] sm:$0xff] %v747_v26  ;;  %v748_v28 = vadd.f32 %v743_v27, %v250_v24 }
 0x13a   : > { %752 = vst [vmem:[#allocation2 + $0x8] sm:$0xff] %v748_v28 }
 0x13b   : > { %v763_v29 = vlaneseq  ;;  %v761_v31 = vld [vmem:[%s1460_s2] sm:$0x3]  ;;  %v757_v32 = vld [vmem:[#allocation2 + $0x10] sm:$0xff] }
 0x13d   : > { %v764_v30 = vshrl.u32 %v763_v29, 7  ;;  %v758_v35 = vld [vmem:[#allocation2] sm:$0xff] }
 0x13f   : > { %v765_v33 = vsub.s32 0, %v764_v30  ;;  %v769_v34 = vsub.s32 1, %v764_v30  ;;  %v759_v36 = vld [vmem:[#allocation2 + $0x18] sm:$0xff] }
 0x141   : > { %v760_v37 = vld [vmem:[#allocation2 + $0x8] sm:$0xff]  ;;  %v766_v38 = vrot.slane %v761_v31, %v765_v33  ;;  %v770_v39 = vrot.slane %v761_v31, %v769_v34 }
 0x143   : > { %v773_v40 = vadd.f32 %v766_v38, %v757_v32  ;;  %v774_v41 = vadd.f32 %v770_v39, %v758_v35  ;;  %v775_v42 = vadd.f32 %v766_v38, %v759_v36  ;;  %v776_v43 = vadd.f32 %v770_v39, %v760_v37 }
 0x145   : > { %v786_v44 = vadd.f32 %v775_v42, %v773_v40  ;;  %v793_v45 = vadd.f32 %v776_v43, %v774_v41 }
 0x147   : > { %v787_v46 = vrot.slane %v786_v44, 4  ;;  %v794_v47 = vrot.slane %v793_v45, 4 }
 0x149   : > { %v788_v48 = vadd.f32 %v787_v46, %v786_v44  ;;  %v795_v49 = vadd.f32 %v794_v47, %v793_v45 }
 0x14b   : > { %v789_v50 = vrot.slane %v788_v48, 2  ;;  %v796_v51 = vrot.slane %v795_v49, 2 }
 0x14d   : > { %v790_v52 = vadd.f32 %v789_v50, %v788_v48  ;;  %v797_v53 = vadd.f32 %v796_v51, %v795_v49 }
 0x14f   : > { %v791_v54 = vrot.slane %v790_v52, 1  ;;  %v798_v55 = vrot.slane %v797_v53, 1 }
 0x151   : > { %v792_v56 = vadd.f32 %v791_v54, %v790_v52  ;;  %v799_v57 = vadd.f32 %v798_v55, %v797_v53 }
 0x153   : > { %v800_v58 = vmul.f32 0.0625, %v792_v56  ;;  %v801_v59 = vmul.f32 0.0625, %v799_v57 }
 0x155   : > { %v802_v60 = vsub.f32 %v773_v40, %v800_v58  ;;  %v803_v61 = vsub.f32 %v774_v41, %v801_v59  ;;  %v804_v62 = vsub.f32 %v775_v42, %v800_v58  ;;  %v805_v63 = vsub.f32 %v776_v43, %v801_v59 }
 0x157   : > { %v810_v0 = vmul.f32 %v802_v60, %v802_v60  ;;  %v811_v1 = vmul.f32 %v803_v61, %v803_v61  ;;  %v812_v2 = vmul.f32 %v804_v62, %v804_v62  ;;  %v813_v3 = vmul.f32 %v805_v63, %v805_v63 }
 0x159   : > { %v814_v4 = vadd.f32 %v812_v2, %v810_v0  ;;  %v821_v5 = vadd.f32 %v813_v3, %v811_v1 }
 0x15b   : > { %v815_v6 = vrot.slane %v814_v4, 4  ;;  %v822_v7 = vrot.slane %v821_v5, 4 }
 0x15d   : > { %v816_v8 = vadd.f32 %v815_v6, %v814_v4  ;;  %v823_v9 = vadd.f32 %v822_v7, %v821_v5 }
 0x15f   : > { %v817_v10 = vrot.slane %v816_v8, 2  ;;  %v824_v11 = vrot.slane %v823_v9, 2 }
 0x161   : > { %v818_v12 = vadd.f32 %v817_v10, %v816_v8  ;;  %v825_v13 = vadd.f32 %v824_v11, %v823_v9 }
 0x163   : > { %v819_v14 = vrot.slane %v818_v12, 1  ;;  %v826_v15 = vrot.slane %v825_v13, 1 }
 0x165   : > { %v820_v16 = vadd.f32 %v819_v14, %v818_v12  ;;  %v827_v17 = vadd.f32 %v826_v15, %v825_v13 }
 0x167   : > { %v828_v18 = vmul.f32 0.0625, %v820_v16  ;;  %v829_v19 = vmul.f32 0.0625, %v827_v17 }
 0x169   : > { %v830_v20 = vadd.f32 1e-05, %v828_v18  ;;  %v831_v21 = vadd.f32 1e-05, %v829_v19 }
 0x16b   : > { %1203 = vrsqrt.f32 %v830_v20 }
 0x16c   : > { %1205 = vrsqrt.f32 %v831_v21 }
 0x178   : > { %v1204_v22 = vpop.eup %1203 }
 0x179   : > { %v1206_v23 = vpop.eup %1205  ;;  %v834_v24 = vmul.f32 %v1204_v22, %v802_v60  ;;  %v836_v25 = vmul.f32 %v1204_v22, %v804_v62 }
 0x17a   : > { %v835_v26 = vmul.f32 %v1206_v23, %v803_v61  ;;  %v837_v27 = vmul.f32 %v1206_v23, %v805_v63 }
 0x17b   : > { %vm838_vm0 = vcmp.ge.f32.partialorder %v834_v24, 0.0  ;;  %v842_v28 = vmul.f32 0.2, %v834_v24  ;;  %vm840_vm1 = vcmp.ge.f32.partialorder %v836_v25, 0.0  ;;  %v844_v29 = vmul.f32 0.2, %v836_v25 }
 0x17c   : > { %vm839_vm2 = vcmp.ge.f32.partialorder %v835_v26, 0.0  ;;  %v843_v30 = vmul.f32 0.2, %v835_v26  ;;  %vm841_vm3 = vcmp.ge.f32.partialorder %v837_v27, 0.0  ;;  %v845_v31 = vmul.f32 0.2, %v837_v27 }
 0x17d   : > { %v846_v32 = vsel %vm838_vm0, %v834_v24, %v842_v28  ;;  %v848_v33 = vsel %vm840_vm1, %v836_v25, %v844_v29 }
 0x17e   : > { %v847_v34 = vsel %vm839_vm2, %v835_v26, %v843_v30  ;;  %v849_v35 = vsel %vm841_vm3, %v837_v27, %v845_v31 }
 0x17f   : > { %v1042_v36 = vpack.c.bf16 %v847_v34, %v846_v32  ;;  %v1043_v37 = vpack.c.bf16 %v849_v35, %v848_v33 }
 0x181   : > { %862 = vst [vmem:[%s1358_s29] sm:$0xff] %v1042_v36  ;;  %863 = vst [vmem:[%s1358_s29 + $0x8] sm:$0xff] %v1043_v37 }
 0x182 PF: > { %s13_s18 = sadd.s32 1, %s1261_s18   ;;  %s1462_s12 = smov %s1241_s13 }
 0x183   : > { %p10_p0 = scmp.ge.s32.totalorder %s13_s18, 10   ;;  %s1463_s13 = smov %s1335_s25 }
 0x184   : > { %s1464_s14 = smov %s1253_s16  ;;  %s1465_s15 = smov %s1257_s17 }
 0x185   : > { %s1466_s16 = smov %s1469_s19  ;;  %s1467_s17 = smov %s1473_s20 }
 0x186   :  { %12 = sbr.rel (!%p10_p0) target bundleno = 4 (0x4), region = 101 }

// kernel: fwd.9
= control target key start
LH: loop header
LB: loop body
LE: loop exit
PB: predicated region body
PF: predicated region fallthrough
CT: control target
= control target key end

     0   :  { %s1181_s12 = smov 0   ;;  %s1183_s13 = smov 0   ;;  %s1322_s0 = inlined_call_operand.vmem [shape: bf16[56,4096], index: 0, kind: input, shape index: {}]   ;;  %s1323_s1 = inlined_call_operand.vmem [shape: bf16[4096,128], index: 1, kind: input, shape index: {}]   ;;  %s1324_s2 = inlined_call_operand.vmem [shape: f32[1,128], index: 2, kind: input, shape index: {}]   ;;  %s1325_s3 = inlined_call_operand.vmem [shape: f32[56,128], index: 3, kind: output, shape index: {}]  }
   0x1   :  { %s1185_s14 = smov 0   ;;  %s1187_s15 = smov 0  }
   0x2   :  { %s1189_s16 = smov 0  }
   0x3 LB: > { %s22_s17 = sadd.s32 1, %s1154_s15  ;;  %p41_p1 = scmp.ne.s32.totalorder %s1146_s13, %s1142_s12  ;;  %s1158_s16 = sphi %s1189_s16, %s13_s16   ;;  %s1154_s15 = sphi %s1187_s15, %s1329_s15   ;;  %s1150_s14 = sphi %s1185_s14, %s1328_s14   ;;  %s1146_s13 = sphi %s1183_s13, %s1327_s13   ;;  %s1142_s12 = sphi %s1181_s12, %s1326_s12  }
   0x4   : > { %p23_p0 = scmp.ge.s32.totalorder %s22_s17, 8  ;;  %p42_p2 = scmp.eq.s32.totalorder %s1158_s16, 0 }
   0x5   : > { %s34_s19 = sadd.s32 1, %s1146_s13  ;;  %p881_p5 = scmp.ge.s32.totalorder %s1158_s16, 8 }
   0x6   : > { %s1331_s17 = smov (%p23_p0, %s22_s17), 0  ;;  %p43_p3 = por %p42_p2, %p41_p1 }
   0x7   : > { %s30_s18 = ssub.s32 %s1154_s15, %s1331_s17  ;;  %143 = sbr.rel (%p881_p5) target bundleno = 23 (0x17), region = 20 }
   0x8   : > { %p32_p4 = scmp.eq.s32.totalorder %s30_s18, 0 }
   0xa   : > { %s1216_s20 = scalar_select %p32_p4, %s1146_s13, %s34_s19  }
   0xc   : > { %146 = sbr.rel (!%p43_p3) target bundleno = 23 (0x17), region = 24  ;;  %s148_s21 = sand.u32 (%p43_p3), 1, %s1146_s13  }
   0xd   : > { %s942_s22 = sshll.u32 (%p43_p3), %s1154_s15, 4  ;;  %s1023_s23 = smul.u32 (%p43_p3), 112, %s148_s21 }
   0xe   : > { %s156_s26 = scalar_lea.vmem (%p43_p3), %s1322_s0, %s942_s22 }
   0xf   : > { %v169_v0 = vld [vmem:[%s156_s26] sm:$0xff] (%p43_p3)  ;;  %v171_v1 = vld [vmem:[%s156_s26 + $0x8] sm:$0xff] (%p43_p3)  ;;  %s150_s27 = scalar_lea.vmem (%p43_p3), [#allocation3], %s1023_s23 }
  0x10   : > { %v173_v2 = vld [vmem:[%s156_s26 + $0x80] sm:$0xff] (%p43_p3)  ;;  %v175_v3 = vld [vmem:[%s156_s26 + $0x88] sm:$0xff] (%p43_p3)  ;;  %170 = vst [vmem:[%s150_s27] sm:$0xff] (%p43_p3), %v169_v0  ;;  %172 = vst [vmem:[%s150_s27 + $0x8] sm:$0xff] (%p43_p3), %v171_v1 }
  0x11   : > { %v177_v4 = vld [vmem:[%s156_s26 + $0x100] sm:$0xff]  ;;  %v179_v5 = vld [vmem:[%s156_s26 + $0x108] sm:$0xff]  ;;  %174 = vst [vmem:[%s150_s27 + $0x10] sm:$0xff] %v173_v2  ;;  %176 = vst [vmem:[%s150_s27 + $0x18] sm:$0xff] %v175_v3 }
  0x12   : > { %178 = vst [vmem:[%s150_s27 + $0x20] sm:$0xff] %v177_v4  ;;  %180 = vst [vmem:[%s150_s27 + $0x28] sm:$0xff] %v179_v5  ;;  %v181_v6 = vld [vmem:[%s156_s26 + $0x180] sm:$0xff]  ;;  %v183_v7 = vld [vmem:[%s156_s26 + $0x188] sm:$0xff] }
  0x13   : > { %v185_v8 = vld [vmem:[%s156_s26 + $0x200] sm:$0xff]  ;;  %182 = vst [vmem:[%s150_s27 + $0x30] sm:$0xff] %v181_v6  ;;  %184 = vst [vmem:[%s150_s27 + $0x38] sm:$0xff] %v183_v7  ;;  %v187_v9 = vld [vmem:[%s156_s26 + $0x208] sm:$0xff] }
  0x14   : > { %186 = vst [vmem:[%s150_s27 + $0x40] sm:$0xff] %v185_v8  ;;  %v189_v10 = vld [vmem:[%s156_s26 + $0x280] sm:$0xff]  ;;  %v191_v11 = vld [vmem:[%s156_s26 + $0x288] sm:$0xff]  ;;  %188 = vst [vmem:[%s150_s27 + $0x48] sm:$0xff] %v187_v9 }
  0x15   : > { %190 = vst [vmem:[%s150_s27 + $0x50] sm:$0xff] %v189_v10  ;;  %192 = vst [vmem:[%s150_s27 + $0x58] sm:$0xff] %v191_v11  ;;  %v193_v12 = vld [vmem:[%s156_s26 + $0x300] sm:$0xff]  ;;  %v195_v13 = vld [vmem:[%s156_s26 + $0x308] sm:$0xff] }
  0x16   : > { %194 = vst [vmem:[%s150_s27 + $0x60] sm:$0xff] %v193_v12  ;;  %196 = vst [vmem:[%s150_s27 + $0x68] sm:$0xff] %v195_v13 }
  0x17 PF: > { %p884_p6 = scmp.ge.s32.totalorder %s1158_s16, 1  ;;  %p210_p7 = scmp.lt.s32.totalorder %s1158_s16, 9 }
  0x19   : > { %p211_p8 = pnand %p884_p6, %p210_p7 }
  0x1a   : > { %s217_s28 = sand.u32 (!%p211_p8), 1, %s1142_s12   ;;  %s885_s29 = sshll.u32 (!%p211_p8), %s1150_s14, 6 }
  0x1b   : > { %214 = sbr.rel (%p211_p8) target bundleno = 313 (0x139), region = 51  ;;  %p248_p9 = scmp.lt.s32.totalorder (!%p211_p8), %s885_s29, 511 }
  0x1c   : > { %s1024_s30 = smul.u32 (!%p211_p8), 112, %s217_s28  ;;  %p887_p10 = scmp.ne.s32.totalorder (!%p211_p8), %s1150_s14, 0 }
  0x1e   : > { %s1233_s8 = scalar_lea.vmem (!%p211_p8), [#allocation3], %s1024_s30 }
  0x20   : > { %s1333_s29 = smov (!%p248_p9, %s885_s29), 511  ;;  %263 = sbr.rel (%p887_p10) target bundleno = 42 (0x2a), region = 59 }
  0x21   : > { %s886_s4 = sshll.u32 %s1333_s29, 2 }
  0x22   : > { %s1231_s7 = scalar_lea.vmem %s1323_s1, %s886_s4 }
  0x25   : > { %v1160_v14 = vmov 0.0  }
  0x26   : > { %264 = vst [vmem:[#allocation2 + $0x30] sm:$0xff] %v1160_v14  ;;  %265 = vst [vmem:[#allocation2] sm:$0xff] %v1160_v14 }
  0x27   : > { %266 = vst [vmem:[#allocation2 + $0x18] sm:$0xff] %v1160_v14  ;;  %267 = vst [vmem:[#allocation2 + $0x10] sm:$0xff] %v1160_v14 }
  0x28   : > { %268 = vst [vmem:[#allocation2 + $0x8] sm:$0xff] %v1160_v14  ;;  %269 = vst [vmem:[#allocation2 + $0x20] sm:$0xff] %v1160_v14 }
  0x29   : > { %270 = vst [vmem:[#allocation2 + $0x28] sm:$0xff] %v1160_v14 }
  0x2a PF: > { %v1066_v15 = vld [vmem:[%s1231_s7 + $0x78] sm:$0xff]   ;;  %v1070_v19 = vld [vmem:[%s1231_s7 + $0x70] sm:$0xff]   ;;  %v1074_v23 = vld [vmem:[%s1231_s7 + $0x68] sm:$0xff]   ;;  %p936_p11 = scmp.ne.s32.totalorder %s1150_s14, 7 }
  0x2b   : > { %v1067_v16 = vld [vmem:[%s1231_s7 + $0xf8] sm:$0xff]   ;;  %943 = vmatprep.subr.bf16.mxu0 %v1066_v15  ;;  %v1071_v20 = vld [vmem:[%s1231_s7 + $0xf0] sm:$0xff]   ;;  %v1075_v24 = vld [vmem:[%s1231_s7 + $0xe8] sm:$0xff]  }
  0x2c   : > { %v1068_v17 = vld [vmem:[%s1231_s7 + $0x38] sm:$0xff]   ;;  %983 = vmatprep.subr.bf16.mxu1 %v1067_v16  ;;  %v1072_v21 = vld [vmem:[%s1231_s7 + $0x30] sm:$0xff]   ;;  %v1076_v25 = vld [vmem:[%s1231_s7 + $0x28] sm:$0xff]  }
  0x2d   : > { %v1069_v18 = vld [vmem:[%s1231_s7 + $0xb8] sm:$0xff]   ;;  %944 = vmatpush3.bf16.msra.mxu0 %v1068_v17  ;;  %v1073_v22 = vld [vmem:[%s1231_s7 + $0xb0] sm:$0xff]   ;;  %v1077_v26 = vld [vmem:[%s1231_s7 + $0xa8] sm:$0xff]  }
  0x2e   : > { %984 = vmatpush3.bf16.msra.mxu1 %v1069_v18  ;;  %945 = vmatprep.subr.bf16.mxu0 %v1070_v19  ;;  %v1078_v27 = vld [vmem:[%s1231_s7 + $0x60] sm:$0xff]   ;;  %v1082_v31 = vld [vmem:[%s1231_s7 + $0x58] sm:$0xff]   ;;  %v1086_v35 = vld [vmem:[%s1231_s7 + $0x50] sm:$0xff]  }
  0x2f   : > { %985 = vmatprep.subr.bf16.mxu1 %v1071_v20  ;;  %v1079_v28 = vld [vmem:[%s1231_s7 + $0xe0] sm:$0xff]   ;;  %v1083_v32 = vld [vmem:[%s1231_s7 + $0xd8] sm:$0xff]   ;;  %v1087_v36 = vld [vmem:[%s1231_s7 + $0xd0] sm:$0xff]  }
  0x30   : > { %v1080_v29 = vld [vmem:[%s1231_s7 + $0x20] sm:$0xff]   ;;  %v1084_v33 = vld [vmem:[%s1231_s7 + $0x18] sm:$0xff]   ;;  %v1088_v37 = vld [vmem:[%s1231_s7 + $0x10] sm:$0xff]  }
  0x31   : > { %946 = vmatpush3.bf16.msra.mxu0 %v1072_v21  ;;  %v1081_v30 = vld [vmem:[%s1231_s7 + $0xa0] sm:$0xff]   ;;  %v1085_v34 = vld [vmem:[%s1231_s7 + $0x98] sm:$0xff]   ;;  %v1089_v38 = vld [vmem:[%s1231_s7 + $0x90] sm:$0xff]  }
  0x32   : > { %986 = vmatpush3.bf16.msra.mxu1 %v1073_v22  ;;  %947 = vmatprep.subr.bf16.mxu0 %v1074_v23  ;;  %v1090_v39 = vld [vmem:[%s1231_s7 + $0x48] sm:$0xff]   ;;  %v1094_v43 = vld [vmem:[%s1231_s7 + $0x40] sm:$0xff]   ;;  %v271_v8 = vld [vmem:[#allocation2 + $0x30] sm:$0xff] }
  0x33   : > { %987 = vmatprep.subr.bf16.mxu1 %v1075_v24  ;;  %v1091_v40 = vld [vmem:[%s1231_s7 + $0xc8] sm:$0xff]   ;;  %v1095_v44 = vld [vmem:[%s1231_s7 + $0xc0] sm:$0xff]  }
  0x34   : > { %v1092_v41 = vld [vmem:[%s1231_s7 + $0x8] sm:$0xff]   ;;  %v1096_v45 = vld [vmem:[%s1231_s7] sm:$0xff]  }
  0x35   : > { %948 = vmatpush3.bf16.msra.mxu0 %v1076_v25  ;;  %v1093_v42 = vld [vmem:[%s1231_s7 + $0x88] sm:$0xff]   ;;  %v1097_v46 = vld [vmem:[%s1231_s7 + $0x80] sm:$0xff]  }
  0x36   : > { %988 = vmatpush3.bf16.msra.mxu1 %v1077_v26  ;;  %949 = vmatprep.subr.bf16.mxu0 %v1078_v27  ;;  %v1098_v47 = vld [vmem:[%s1233_s8] ss:$16 sps:$4 sm:$0xff]   ;;  %v1100_v48 = vld [vmem:[%s1233_s8 + $0x4] ss:$16 sps:$4 sm:$0xff]   ;;  %v1101_v49 = vld [vmem:[%s1233_s8 + $0x8] ss:$16 sps:$4 sm:$0xff]  }
  0x37   : > { %989 = vmatprep.subr.bf16.mxu1 %v1079_v28  ;;  %v1103_v50 = vld [vmem:[%s1233_s8 + $0xc] ss:$16 sps:$4 sm:$0xff]   ;;  %654 = vmatprep.mubr.bf16.mxu0 %v1100_v48  ;;  %v1104_v51 = vld [vmem:[%s1233_s8 + $0x24] ss:$16 sps:$4 sm:$0xff]   ;;  %v1108_v53 = vld [vmem:[%s1233_s8 + $0x20] ss:$16 sps:$4 sm:$0xff]  }
  0x38   : > { %718 = vmatprep.mubr.bf16.mxu1 %v1103_v50  ;;  %v1106_v52 = vld [vmem:[%s1233_s8 + $0x2c] ss:$16 sps:$4 sm:$0xff]   ;;  %v1109_v54 = vld [vmem:[%s1233_s8 + $0x28] ss:$16 sps:$4 sm:$0xff]   ;;  %v1110_v55 = vld [vmem:[%s1233_s8 + $0x44] ss:$16 sps:$4 sm:$0xff]  }
  0x39   : > { %950 = vmatpush3.bf16.msra.mxu0 %v1080_v29  ;;  %v1112_v56 = vld [vmem:[%s1233_s8 + $0x4c] ss:$16 sps:$4 sm:$0xff]   ;;  %v290_v57 = vld [vmem:[%s1233_s8 + $0x60] sm:$0xff]  ;;  %v1115_v60 = vld [vmem:[%s1233_s8 + $0x48] ss:$16 sps:$4 sm:$0xff]  }
  0x3a   : > { %990 = vmatpush3.bf16.msra.mxu1 %v1081_v30  ;;  %951 = vmatprep.subr.bf16.mxu0 %v1082_v31  ;;  %v291_v58 = vld [vmem:[%s1233_s8 + $0x68] sm:$0xff]  ;;  %v1114_v59 = vld [vmem:[%s1233_s8 + $0x40] ss:$16 sps:$4 sm:$0xff]   ;;  %v901_v61 = vcombine.high %v290_v57, %v290_v57  ;;  %v900_v63 = vcombine.low %v290_v57, %v290_v57 }
  0x3b   : > { %991 = vmatprep.subr.bf16.mxu1 %v1083_v32  ;;  %v903_v62 = vcombine.high %v291_v58, %v291_v58  ;;  %v902_v0 = vcombine.low %v291_v58, %v291_v58  ;;  %v272_v17 = vld [vmem:[#allocation2] sm:$0xff]  ;;  %v273_v26 = vld [vmem:[#allocation2 + $0x18] sm:$0xff] }
  0x3d   : > { %952 = vmatpush3.bf16.msra.mxu0 %v1084_v33 }
  0x3e   : > { %992 = vmatpush3.bf16.msra.mxu1 %v1085_v34  ;;  %953 = vmatprep.subr.bf16.mxu0 %v1086_v35  ;;  %v274_v35 = vld [vmem:[#allocation2 + $0x10] sm:$0xff] }
  0x3f   : > { %993 = vmatprep.subr.bf16.mxu1 %v1087_v36 }
  0x41   : > { %954 = vmatpush3.bf16.msra.mxu0 %v1088_v37 }
  0x42   : > { %994 = vmatpush3.bf16.msra.mxu1 %v1089_v38  ;;  %955 = vmatprep.subr.bf16.mxu0 %v1090_v39 }
  0x43   : > { %995 = vmatprep.subr.bf16.mxu1 %v1091_v40 }
  0x45   : > { %956 = vmatpush3.bf16.msra.mxu0 %v1092_v41 }
  0x46   : > { %996 = vmatpush3.bf16.msra.mxu1 %v1093_v42  ;;  %957 = vmatprep.subr.bf16.mxu0 %v1094_v43 }
  0x47   : > { %997 = vmatprep.subr.bf16.mxu1 %v1095_v44  ;;  %v275_v44 = vld [vmem:[#allocation2 + $0x8] sm:$0xff] }
  0x49   : > { %958 = vmatpush3.bf16.msra.mxu0 %v1096_v45 }
  0x4a   : > { %998 = vmatpush3.bf16.msra.mxu1 %v1097_v46 }
  0x4c   : > { %655 = vmatmul.mubr.bf16.vlgmr.msra.gmra.mxu0 %v1098_v47 }
  0x4d   : > { %719 = vmatmul.mubr.bf16.vlgmr.msra.gmra.mxu1 %v1101_v49  ;;  %662 = vmatprep.mubr.bf16.mxu0 %v1104_v51 }
  0x4e   : > { %726 = vmatprep.mubr.bf16.mxu1 %v1106_v52 }
  0x54   : > { %663 = vmatmul.mubr.bf16.gmra.mxu0 %v1108_v53  ;;  %v276_v53 = vld [vmem:[#allocation2 + $0x20] sm:$0xff] }
  0x55   : > { %727 = vmatmul.mubr.bf16.gmra.mxu1 %v1109_v54  ;;  %670 = vmatprep.mubr.bf16.mxu0 %v1110_v55 }
  0x56   : > { %734 = vmatprep.mubr.bf16.mxu1 %v1112_v56 }
  0x5c   : > { %671 = vmatmul.mubr.bf16.gmra.mxu0 %v1114_v59 }
  0x5d   : > { %735 = vmatmul.mubr.bf16.gmra.mxu1 %v1115_v60  ;;  %678 = vmatprep.mubr.bf16.mxu0 %v901_v61 }
  0x5e   : > { %742 = vmatprep.mubr.bf16.mxu1 %v903_v62  ;;  %v277_v62 = vld [vmem:[#allocation2 + $0x28] sm:$0xff] }
  0x64   : > { %679 = vmatmul.mubr.bf16.gmra.mxu0 %v900_v63 }
  0x65   : > { %743 = vmatmul.mubr.bf16.gmra.mxu1 %v902_v0 }
 0x10c   : > { %v959_v1 = vpop.f32.mrf.mxu0 }
 0x10d   : > { %v999_v2 = vpop.f32.mrf.mxu1 }
 0x10e   : > { %v960_v3 = vpop.f32.mrf.mxu0 }
 0x10f   : > { %v961_v4 = vadd.f32 %v960_v3, %v959_v1  ;;  %v1000_v5 = vpop.f32.mrf.mxu1 }
 0x110   : > { %v1001_v6 = vadd.f32 %v1000_v5, %v999_v2  ;;  %v962_v7 = vpop.f32.mrf.mxu0 }
 0x111   : > { %v1002_v9 = vpop.f32.mrf.mxu1 }
 0x112   : > { %v721_v10 = vadd.f32 %v1001_v6, %v961_v4  ;;  %v963_v11 = vpop.f32.mrf.mxu0 }
 0x113   : > { %v964_v12 = vadd.f32 %v963_v11, %v962_v7  ;;  %v1003_v13 = vpop.f32.mrf.mxu1 }
 0x114   : > { %v750_v14 = vadd.f32 %v721_v10, %v271_v8  ;;  %v1004_v15 = vadd.f32 %v1003_v13, %v1002_v9  ;;  %v965_v16 = vpop.f32.mrf.mxu0 }
 0x115   : > { %v1005_v18 = vpop.f32.mrf.mxu1 }
 0x116   : > { %757 = vst [vmem:[#allocation2 + $0x30] sm:$0xff] %v750_v14  ;;  %v724_v19 = vadd.f32 %v1004_v15, %v964_v12  ;;  %v966_v20 = vpop.f32.mrf.mxu0 }
 0x117   : > { %v967_v21 = vadd.f32 %v966_v20, %v965_v16  ;;  %v1006_v22 = vpop.f32.mrf.mxu1 }
 0x118   : > { %v751_v23 = vadd.f32 %v724_v19, %v272_v17  ;;  %v1007_v24 = vadd.f32 %v1006_v22, %v1005_v18  ;;  %v968_v25 = vpop.f32.mrf.mxu0 }
 0x119   : > { %v1008_v27 = vpop.f32.mrf.mxu1 }
 0x11a   : > { %758 = vst [vmem:[#allocation2] sm:$0xff] %v751_v23  ;;  %v729_v28 = vadd.f32 %v1007_v24, %v967_v21  ;;  %v969_v29 = vpop.f32.mrf.mxu0 }
 0x11b   : > { %v970_v30 = vadd.f32 %v969_v29, %v968_v25  ;;  %v1009_v31 = vpop.f32.mrf.mxu1 }
 0x11c   : > { %v752_v32 = vadd.f32 %v729_v28, %v273_v26  ;;  %v1010_v33 = vadd.f32 %v1009_v31, %v1008_v27  ;;  %v971_v34 = vpop.f32.mrf.mxu0 }
 0x11d   : > { %v1011_v36 = vpop.f32.mrf.mxu1 }
 0x11e   : > { %759 = vst [vmem:[#allocation2 + $0x18] sm:$0xff] %v752_v32  ;;  %v732_v37 = vadd.f32 %v1010_v33, %v970_v30  ;;  %v972_v38 = vpop.f32.mrf.mxu0 }
 0x11f   : > { %v973_v39 = vadd.f32 %v972_v38, %v971_v34  ;;  %v1012_v40 = vpop.f32.mrf.mxu1 }
 0x120   : > { %v753_v41 = vadd.f32 %v732_v37, %v274_v35  ;;  %v1013_v42 = vadd.f32 %v1012_v40, %v1011_v36  ;;  %v974_v43 = vpop.f32.mrf.mxu0 }
 0x121   : > { %v1014_v45 = vpop.f32.mrf.mxu1 }
 0x122   : > { %760 = vst [vmem:[#allocation2 + $0x10] sm:$0xff] %v753_v41  ;;  %v737_v46 = vadd.f32 %v1013_v42, %v973_v39  ;;  %v975_v47 = vpop.f32.mrf.mxu0 }
 0x123   : > { %v976_v48 = vadd.f32 %v975_v47, %v974_v43  ;;  %v1015_v49 = vpop.f32.mrf.mxu1 }
 0x124   : > { %v754_v50 = vadd.f32 %v737_v46, %v275_v44  ;;  %v1016_v51 = vadd.f32 %v1015_v49, %v1014_v45  ;;  %v977_v52 = vpop.f32.mrf.mxu0 }
 0x125   : > { %v1017_v54 = vpop.f32.mrf.mxu1 }
 0x126   : > { %761 = vst [vmem:[#allocation2 + $0x8] sm:$0xff] %v754_v50  ;;  %v740_v55 = vadd.f32 %v1016_v51, %v976_v48  ;;  %v978_v56 = vpop.f32.mrf.mxu0 }
 0x127   : > { %v979_v57 = vadd.f32 %v978_v56, %v977_v52  ;;  %v1018_v58 = vpop.f32.mrf.mxu1 }
 0x128   : > { %v755_v59 = vadd.f32 %v740_v55, %v276_v53  ;;  %v1019_v60 = vadd.f32 %v1018_v58, %v1017_v54  ;;  %v980_v61 = vpop.f32.mrf.mxu0 }
 0x129   : > { %v1020_v63 = vpop.f32.mrf.mxu1 }
 0x12a   : > { %762 = vst [vmem:[#allocation2 + $0x20] sm:$0xff] %v755_v59  ;;  %v745_v0 = vadd.f32 %v1019_v60, %v979_v57  ;;  %v981_v1 = vpop.f32.mrf.mxu0  ;;  %767 = sbr.rel (%p936_p11) target bundleno = 313 (0x139), region = 63 }
 0x12b   : > { %v1021_v2 = vpop.f32.mrf.mxu1 }
 0x12c   : > { %v756_v3 = vadd.f32 %v745_v0, %v277_v62 }
 0x12e   : > { %763 = vst [vmem:[#allocation2 + $0x28] sm:$0xff] %v756_v3 }
 0x12f   : > { %v768_v4 = vld [vmem:[#allocation2 + $0x30] sm:$0xff]  ;;  %v937_v5 = vld [vmem:[%s1324_s2] ss:$0 sm:$0xff]  ;;  %v770_v9 = vld [vmem:[#allocation2 + $0x18] sm:$0xff] }
 0x130   : > { %v769_v6 = vld [vmem:[#allocation2] sm:$0xff]  ;;  %v782_v7 = vadd.f32 %v937_v5, %v768_v4  ;;  %v771_v10 = vld [vmem:[#allocation2 + $0x10] sm:$0xff]  ;;  %v772_v11 = vld [vmem:[#allocation2 + $0x8] sm:$0xff]  ;;  %v784_v12 = vadd.f32 %v937_v5, %v770_v9 }
 0x131   : > { %v783_v8 = vadd.f32 %v937_v5, %v769_v6  ;;  %v785_v13 = vadd.f32 %v937_v5, %v771_v10  ;;  %v786_v14 = vadd.f32 %v937_v5, %v772_v11  ;;  %v773_v15 = vld [vmem:[#allocation2 + $0x20] sm:$0xff] }
 0x132   : > { %789 = vst [vmem:[%s1325_s3] sm:$0xff] %v782_v7  ;;  %v787_v17 = vadd.f32 %v937_v5, %v773_v15  ;;  %791 = vst [vmem:[%s1325_s3 + $0x10] sm:$0xff] %v784_v12 }
 0x133   : > { %790 = vst [vmem:[%s1325_s3 + $0x8] sm:$0xff] %v783_v8  ;;  %792 = vst [vmem:[%s1325_s3 + $0x18] sm:$0xff] %v785_v13 }
 0x134   : > { %793 = vst [vmem:[%s1325_s3 + $0x20] sm:$0xff] %v786_v14  ;;  %794 = vst [vmem:[%s1325_s3 + $0x28] sm:$0xff] %v787_v17 }
 0x135   : > { %v774_v16 = vld [vmem:[#allocation2 + $0x28] sm:$0xff] }
 0x136   : > { %v788_v18 = vadd.f32 %v937_v5, %v774_v16 }
 0x138   : > { %795 = vst [vmem:[%s1325_s3 + $0x30] sm:$0xff] %v788_v18 }
 0x139 PF: > { %s13_s16 = sadd.s32 1, %s1158_s16   ;;  %s1326_s12 = smov %s1146_s13 }
 0x13a   : > { %p10_p12 = scmp.ge.s32.totalorder %s13_s16, 10   ;;  %s1327_s13 = smov %s1216_s20 }
 0x13b   : > { %s1328_s14 = smov %s1154_s15  ;;  %s1329_s15 = smov %s1331_s17 }
 0x13c   :  { %12 = sbr.rel (!%p10_p12) target bundleno = 3 (0x3), region = 101 }

</bundles_post_ra>
